<compile_context>
chip_gen: v6e
topology: v6e:2x2x1
jax: 0.10.0
libtpu: 0.0.40
codegen_flags: <defaults>
</compile_context>

<pallas_src>
import functools

import jax
import jax.numpy as jnp
import numpy as np
from jax import lax
from jax.experimental import pallas as pl
from jax.experimental.pallas import tpu as pltpu

_EPS = 1e-12  # F.normalize default eps


def _agm_kernel(n_steps,
                xT_ref, w_inT_ref, b_inT_ref, ns_ref, esum_ref,
                w_outT_ref, b_outT_ref, outT_ref):
    # input_proj, transposed: xt[d, b] = (w_in^T @ x^T)[d, b] + b_in[d]
    xt = jnp.dot(w_inT_ref[...], xT_ref[...],
                 preferred_element_type=jnp.float32) + b_inT_ref[...]     # (D, tb)

    # states[n, d, b] = neuron_states[n, d] + xt[d, b]
    states = ns_ref[...] + xt[None, :, :]                                 # (N, D, tb)

    # Hoisted (N, D, 1) edge-sum; trailing unit dim broadcasts along lanes
    # inside the multiply (nothing materialized at (N, D, tb)).
    e = esum_ref[...]                                                     # (N, D, 1)

    out = states[-1]                                                      # n_steps == 0 path
    for step in range(n_steps):   # n_steps is tiny (3); deliberate static unroll
        # The two einsums
        #   transform = einsum('bnd,nje->bnjde', states, ev_nrm)
        #   messages  = einsum('bnjde,bne->bnd', transform, states)
        # collapse exactly to
        #   messages[b,n,d] = states[b,n,d] * < e_sum[n,:], states[b,n,:] >
        gate = jnp.sum(e * states, axis=1, keepdims=True)                 # (N, 1, tb)
        states = states + jnp.maximum(states * gate, 0.0)                 # + relu(messages)
        # F.normalize(states, p=2, dim=1): normalize across the neuron axis.
        # Leading-dim reduce -> plain VALU adds over N slabs.
        sumsq = jnp.sum(states * states, axis=0, keepdims=True)           # (1, D, tb)
        inv = lax.rsqrt(jnp.maximum(sumsq, _EPS * _EPS))                  # EUP
        if step + 1 < n_steps:
            states = states * inv
        else:
            # Only the last neuron row feeds the heads; skip rescaling the rest.
            out = states[-1] * inv[0]                                     # (D, tb)

    # Fused (recreate_proj | score_proj | zero-pad) head: one lane-dense matmul.
    outT_ref[...] = jnp.dot(w_outT_ref[...], out,
                            preferred_element_type=jnp.float32) + b_outT_ref[...]


def _round_up(v, m):
    return (v + m - 1) // m * m


def _pick_tb(B, N, D):
    # Batch rows live on the 128-lane axis, so tb must be a multiple of 128.
    # Grow the tile for large batches (amortizes ~0.35us per-grid-step overhead;
    # plenty of VMEM on v5e/v6e) while keeping >= 2 grid steps whenever B allows
    # it, so dimension_semantics=("parallel",) can shard across v7x's two cores.
    tb = 128
    while tb < 512 and B >= 4 * tb and 4 * 8 * N * D * tb <= (16 << 20):
        tb *= 2
    return tb


def agm_brain_forward(x, params, *, n_steps, n_neurons, grid_size, num_candidates):
    B, F = x.shape
    D = params["neuron_states"].shape[1]
    N = n_neurons

    # ---- parameter-only preprocessing (outside the kernel) --------------------
    ev = params["edge_vectors"]                                          # (N, N, D)
    ev_nrm = ev / jnp.maximum(jnp.linalg.norm(ev, axis=-1, keepdims=True), _EPS)
    e_sum = jnp.sum(ev_nrm, axis=1)                                      # (N, D)

    # Transposed / pre-shaped parameters for the lane-dense (batch-on-lanes) layout.
    w_inT = params["w_in"].T                                             # (D, F)
    b_inT = params["b_in"].T                                             # (D, 1)
    ns3 = params["neuron_states"][:, :, None]                            # (N, D, 1)
    e_sum3 = e_sum[:, :, None]                                           # (N, D, 1)

    # Fused heads: zero padding -> sliced rec/score values unaffected.
    P = _round_up(F + 1, 128)
    w_outT = jnp.zeros((P, D), jnp.float32)
    w_outT = w_outT.at[:F, :].set(params["w_rec"].T).at[F, :].set(params["w_sc"][:, 0])
    b_outT = jnp.zeros((P, 1), jnp.float32)
    b_outT = b_outT.at[:F, 0].set(params["b_rec"][0]).at[F, 0].set(params["b_sc"][0, 0])

    # ---- batch tiling (batch on lanes, padded to a full tile) -----------------
    tb = _pick_tb(B, N, D)
    n_blocks = pl.cdiv(B, tb)
    B_pad = n_blocks * tb
    xT = jnp.pad(x.T, ((0, 0), (0, B_pad - B)))                          # (F, B_pad)

    def invariant(shape):
        n = len(shape)
        return pl.BlockSpec(shape, lambda i, _n=n: (0,) * _n)

    in_specs = [
        pl.BlockSpec((F, tb), lambda i: (0, i)),   # x^T, tiled over batch (lanes)
        invariant((D, F)),                         # w_in^T
        invariant((D, 1)),                         # b_in^T
        invariant((N, D, 1)),                      # neuron_states
        invariant((N, D, 1)),                      # e_sum
        invariant((P, D)),                         # fused head weight^T
        invariant((P, 1)),                         # fused head bias^T
    ]
    out_specs = pl.BlockSpec((P, tb), lambda i: (0, i))

    # VMEM budget: double-buffered tiles/params + in-kernel (N, D, tb) temporaries
    # (lane-dense now, no padding blowup); generous headroom, clamped to v7x's
    # 64 MiB physical ceiling.
    param_bytes = 4 * (D * _round_up(F, 128) + D * 128 + 2 * N * D * 128
                       + P * _round_up(D, 128) + P * 128)
    io_bytes = 4 * (_round_up(F, 8) * tb + P * tb)
    temp_bytes = 4 * 6 * N * D * tb
    vmem_limit = 2 * (param_bytes + io_bytes) + temp_bytes + (4 << 20)
    vmem_limit = int(min(max(vmem_limit, 16 << 20), 64 << 20))

    cost = pl.CostEstimate(
        flops=2 * B_pad * F * D + n_steps * B_pad * N * D * 8 + 2 * B_pad * D * P,
        transcendentals=n_steps * B_pad * D,
        bytes_accessed=4 * (B_pad * F + B_pad * P) + param_bytes,
    )

    outT = pl.pallas_call(
        functools.partial(_agm_kernel, n_steps),
        out_shape=jax.ShapeDtypeStruct((P, B_pad), jnp.float32),
        grid=(n_blocks,),
        in_specs=in_specs,
        out_specs=out_specs,
        compiler_params=pltpu.CompilerParams(
            dimension_semantics=("parallel",),
            vmem_limit_bytes=vmem_limit),
        cost_estimate=cost,
    )(xT, w_inT, b_inT, ns3, e_sum3, w_outT, b_outT)

    head = outT[:F + 1, :B].T                                            # (B, F+1)
    rec = head[:, :F]
    sc = head[:, F:F + 1]

    batch_size = B // num_candidates
    embed_dim_doubled = F // grid_size ** 2
    recreation = rec.reshape(batch_size, num_candidates, grid_size ** 2, embed_dim_doubled)
    scores = sc.reshape(batch_size, num_candidates)
    return recreation, scores


def agm_brain_ref(x, params, *, n_steps, grid_size, num_candidates):
    """Pure-JAX reference mirroring the PyTorch code (literal einsums)."""
    eps = 1e-12
    xt = x @ params["w_in"] + params["b_in"]
    states = params["neuron_states"][None, :, :] + xt[:, None, :]
    for _ in range(n_steps):
        ev = params["edge_vectors"]
        ev = ev / jnp.maximum(jnp.linalg.norm(ev, axis=-1, keepdims=True), eps)
        transform = jnp.einsum('bnd,nje->bnjde', states, ev)
        messages = jnp.einsum('bnjde,bne->bnd', transform, states)
        states = states + jnp.maximum(messages, 0.0)
        states = states / jnp.maximum(
            jnp.linalg.norm(states, axis=1, keepdims=True), eps)
    out = states[:, -1, :]
    rec = out @ params["w_rec"] + params["b_rec"]
    sc = out @ params["w_sc"] + params["b_sc"]
    B, F = x.shape
    return (rec.reshape(B // num_candidates, num_candidates,
                        grid_size ** 2, F // grid_size ** 2),
            sc.reshape(B // num_candidates, num_candidates))


if __name__ == "__main__":
    # Small shapes consistent with the module's forward.  NOTE: at these shapes
    # the kernel is pure fixed overhead; the tiling/layout choices above only
    # pay off at realistic batch sizes (hundreds+ rows).
    neuron_dim = 32
    n_neurons = 8
    n_msg_passing_steps = 3
    grid_size = 4
    num_candidates = 2
    embed_dim_doubled = 2
    input_features = grid_size ** 2 * embed_dim_doubled      # 32
    batch_size = 2
    B = batch_size * num_candidates                          # 4

    key = jax.random.PRNGKey(0)
    ks = jax.random.split(key, 9)
    params = dict(
        neuron_states=jax.random.normal(ks[0], (n_neurons, neuron_dim), jnp.float32),
        edge_vectors=jax.random.normal(ks[1], (n_neurons, n_neurons, neuron_dim), jnp.float32),
        w_in=0.1 * jax.random.normal(ks[2], (input_features, neuron_dim), jnp.float32),
        b_in=0.1 * jax.random.normal(ks[3], (1, neuron_dim), jnp.float32),
        w_rec=0.1 * jax.random.normal(ks[4], (neuron_dim, input_features), jnp.float32),
        b_rec=0.1 * jax.random.normal(ks[5], (1, input_features), jnp.float32),
        w_sc=0.1 * jax.random.normal(ks[6], (neuron_dim, 1), jnp.float32),
        b_sc=0.1 * jax.random.normal(ks[7], (1, 1), jnp.float32),
    )
    x = jax.random.normal(ks[8], (B, input_features), jnp.float32)

    recreation, scores = agm_brain_forward(
        x, params, n_steps=n_msg_passing_steps, n_neurons=n_neurons,
        grid_size=grid_size, num_candidates=num_candidates)
    jax.block_until_ready((recreation, scores))

    rec_ref, sc_ref = agm_brain_ref(
        x, params, n_steps=n_msg_passing_steps,
        grid_size=grid_size, num_candidates=num_candidates)

    assert recreation.shape == (batch_size, num_candidates, grid_size ** 2, embed_dim_doubled)
    assert scores.shape == (batch_size, num_candidates)
    np.testing.assert_allclose(np.asarray(recreation), np.asarray(rec_ref),
                               rtol=1e-4, atol=1e-4)
    np.testing.assert_allclose(np.asarray(scores), np.asarray(sc_ref),
                               rtol=1e-4, atol=1e-4)
    print("KERNEL_OK")
</pallas_src>

<mosaic_0001>
module attributes {stable_mosaic.version = 11 : i64} {
  func.func @_agm_kernel(%arg0: i32, %arg1: memref<32x128xf32, #tpu.memory_space<vmem>>, %arg2: memref<32x32xf32, #tpu.memory_space<vmem>>, %arg3: memref<32x1xf32, #tpu.memory_space<vmem>>, %arg4: memref<8x32x1xf32, #tpu.memory_space<vmem>>, %arg5: memref<8x32x1xf32, #tpu.memory_space<vmem>>, %arg6: memref<128x32xf32, #tpu.memory_space<vmem>>, %arg7: memref<128x1xf32, #tpu.memory_space<vmem>>, %arg8: memref<128x128xf32, #tpu.memory_space<vmem>>) attributes {dimension_semantics = [#tpu.dimension_semantics<parallel>], iteration_bounds = array<i64: 1>, scalar_prefetch = 0 : i64, scratch_operands = 0 : i64, tpu.core_type = #tpu.core_type<tc>, window_params = [{transform_indices = @transform_0, window_bounds = array<i64: 32, 128>}, {pipeline_mode = #tpu.pipeline_mode<synchronous>, transform_indices = @transform_1, window_bounds = array<i64: 32, 32>}, {pipeline_mode = #tpu.pipeline_mode<synchronous>, transform_indices = @transform_2, window_bounds = array<i64: 32, 1>}, {pipeline_mode = #tpu.pipeline_mode<synchronous>, transform_indices = @transform_3, window_bounds = array<i64: 8, 32, 1>}, {pipeline_mode = #tpu.pipeline_mode<synchronous>, transform_indices = @transform_4, window_bounds = array<i64: 8, 32, 1>}, {pipeline_mode = #tpu.pipeline_mode<synchronous>, transform_indices = @transform_5, window_bounds = array<i64: 128, 32>}, {pipeline_mode = #tpu.pipeline_mode<synchronous>, transform_indices = @transform_6, window_bounds = array<i64: 128, 1>}, {transform_indices = @transform_7, window_bounds = array<i64: 128, 128>}]} {
    %c0 = arith.constant 0 : index
    %c0_0 = arith.constant 0 : index
    %0 = vector.load %arg2[%c0, %c0_0] : memref<32x32xf32, #tpu.memory_space<vmem>>, vector<32x32xf32>
    %c0_1 = arith.constant 0 : index
    %c0_2 = arith.constant 0 : index
    %1 = vector.load %arg1[%c0_1, %c0_2] : memref<32x128xf32, #tpu.memory_space<vmem>>, vector<32x128xf32>
    %cst = arith.constant dense<0.000000e+00> : vector<32x128xf32>
    %2 = tpu.matmul %0, %1, %cst {dimension_numbers = #tpu.dot_dimension_numbers<[1], [0], [0], [1], [0, 0, 1, 1], [], []>} : vector<32x32xf32>, vector<32x128xf32>, vector<32x128xf32> -> vector<32x128xf32>
    %c0_3 = arith.constant 0 : index
    %c0_4 = arith.constant 0 : index
    %3 = vector.load %arg3[%c0_3, %c0_4] : memref<32x1xf32, #tpu.memory_space<vmem>>, vector<32x1xf32>
    %4 = vector.broadcast %3 : vector<32x1xf32> to vector<32x128xf32>
    %5 = arith.addf %2, %4 : vector<32x128xf32>
    %c0_5 = arith.constant 0 : index
    %c0_6 = arith.constant 0 : index
    %c0_7 = arith.constant 0 : index
    %6 = vector.load %arg4[%c0_5, %c0_6, %c0_7] : memref<8x32x1xf32, #tpu.memory_space<vmem>>, vector<8x32x1xf32>
    %7 = vector.shape_cast %5 : vector<32x128xf32> to vector<1x32x128xf32>
    %8 = vector.broadcast %6 : vector<8x32x1xf32> to vector<8x32x128xf32>
    %9 = vector.broadcast %7 : vector<1x32x128xf32> to vector<8x32x128xf32>
    %10 = arith.addf %8, %9 : vector<8x32x128xf32>
    %c0_8 = arith.constant 0 : index
    %c0_9 = arith.constant 0 : index
    %c0_10 = arith.constant 0 : index
    %11 = vector.load %arg5[%c0_8, %c0_9, %c0_10] : memref<8x32x1xf32, #tpu.memory_space<vmem>>, vector<8x32x1xf32>
    %12 = vector.broadcast %11 : vector<8x32x1xf32> to vector<8x32x128xf32>
    %13 = arith.mulf %12, %10 : vector<8x32x128xf32>
    %cst_11 = arith.constant dense<0.000000e+00> : vector<8x128xf32>
    %14 = vector.multi_reduction <add>, %13, %cst_11 [1] : vector<8x32x128xf32> to vector<8x128xf32>
    %15 = vector.shape_cast %14 : vector<8x128xf32> to vector<8x1x128xf32>
    %16 = vector.broadcast %15 : vector<8x1x128xf32> to vector<8x32x128xf32>
    %17 = arith.mulf %10, %16 : vector<8x32x128xf32>
    %cst_12 = arith.constant 0.000000e+00 : f32
    %18 = vector.broadcast %cst_12 : f32 to vector<8x32x128xf32>
    %19 = arith.maximumf %17, %18 : vector<8x32x128xf32>
    %20 = arith.addf %10, %19 : vector<8x32x128xf32>
    %21 = arith.mulf %20, %20 : vector<8x32x128xf32>
    %cst_13 = arith.constant dense<0.000000e+00> : vector<32x128xf32>
    %22 = vector.multi_reduction <add>, %21, %cst_13 [0] : vector<8x32x128xf32> to vector<32x128xf32>
    %23 = vector.shape_cast %22 : vector<32x128xf32> to vector<1x32x128xf32>
    %cst_14 = arith.constant 1.000000e-24 : f32
    %24 = vector.broadcast %cst_14 : f32 to vector<1x32x128xf32>
    %25 = arith.maximumf %23, %24 : vector<1x32x128xf32>
    %26 = math.rsqrt %25 : vector<1x32x128xf32>
    %27 = vector.broadcast %26 : vector<1x32x128xf32> to vector<8x32x128xf32>
    %28 = arith.mulf %20, %27 : vector<8x32x128xf32>
    %29 = vector.broadcast %11 : vector<8x32x1xf32> to vector<8x32x128xf32>
    %30 = arith.mulf %29, %28 : vector<8x32x128xf32>
    %cst_15 = arith.constant dense<0.000000e+00> : vector<8x128xf32>
    %31 = vector.multi_reduction <add>, %30, %cst_15 [1] : vector<8x32x128xf32> to vector<8x128xf32>
    %32 = vector.shape_cast %31 : vector<8x128xf32> to vector<8x1x128xf32>
    %33 = vector.broadcast %32 : vector<8x1x128xf32> to vector<8x32x128xf32>
    %34 = arith.mulf %28, %33 : vector<8x32x128xf32>
    %cst_16 = arith.constant 0.000000e+00 : f32
    %35 = vector.broadcast %cst_16 : f32 to vector<8x32x128xf32>
    %36 = arith.maximumf %34, %35 : vector<8x32x128xf32>
    %37 = arith.addf %28, %36 : vector<8x32x128xf32>
    %38 = arith.mulf %37, %37 : vector<8x32x128xf32>
    %cst_17 = arith.constant dense<0.000000e+00> : vector<32x128xf32>
    %39 = vector.multi_reduction <add>, %38, %cst_17 [0] : vector<8x32x128xf32> to vector<32x128xf32>
    %40 = vector.shape_cast %39 : vector<32x128xf32> to vector<1x32x128xf32>
    %cst_18 = arith.constant 1.000000e-24 : f32
    %41 = vector.broadcast %cst_18 : f32 to vector<1x32x128xf32>
    %42 = arith.maximumf %40, %41 : vector<1x32x128xf32>
    %43 = math.rsqrt %42 : vector<1x32x128xf32>
    %44 = vector.broadcast %43 : vector<1x32x128xf32> to vector<8x32x128xf32>
    %45 = arith.mulf %37, %44 : vector<8x32x128xf32>
    %46 = vector.broadcast %11 : vector<8x32x1xf32> to vector<8x32x128xf32>
    %47 = arith.mulf %46, %45 : vector<8x32x128xf32>
    %cst_19 = arith.constant dense<0.000000e+00> : vector<8x128xf32>
    %48 = vector.multi_reduction <add>, %47, %cst_19 [1] : vector<8x32x128xf32> to vector<8x128xf32>
    %49 = vector.shape_cast %48 : vector<8x128xf32> to vector<8x1x128xf32>
    %50 = vector.broadcast %49 : vector<8x1x128xf32> to vector<8x32x128xf32>
    %51 = arith.mulf %45, %50 : vector<8x32x128xf32>
    %cst_20 = arith.constant 0.000000e+00 : f32
    %52 = vector.broadcast %cst_20 : f32 to vector<8x32x128xf32>
    %53 = arith.maximumf %51, %52 : vector<8x32x128xf32>
    %54 = arith.addf %45, %53 : vector<8x32x128xf32>
    %55 = arith.mulf %54, %54 : vector<8x32x128xf32>
    %cst_21 = arith.constant dense<0.000000e+00> : vector<32x128xf32>
    %56 = vector.multi_reduction <add>, %55, %cst_21 [0] : vector<8x32x128xf32> to vector<32x128xf32>
    %57 = vector.shape_cast %56 : vector<32x128xf32> to vector<1x32x128xf32>
    %cst_22 = arith.constant 1.000000e-24 : f32
    %58 = vector.broadcast %cst_22 : f32 to vector<1x32x128xf32>
    %59 = arith.maximumf %57, %58 : vector<1x32x128xf32>
    %60 = math.rsqrt %59 : vector<1x32x128xf32>
    %61 = vector.extract_strided_slice %54 {offsets = [7, 0, 0], sizes = [1, 32, 128], strides = [1, 1, 1]} : vector<8x32x128xf32> to vector<1x32x128xf32>
    %62 = vector.shape_cast %61 : vector<1x32x128xf32> to vector<32x128xf32>
    %63 = vector.shape_cast %60 : vector<1x32x128xf32> to vector<32x128xf32>
    %64 = arith.mulf %62, %63 : vector<32x128xf32>
    %c0_23 = arith.constant 0 : index
    %c0_24 = arith.constant 0 : index
    %65 = vector.load %arg6[%c0_23, %c0_24] : memref<128x32xf32, #tpu.memory_space<vmem>>, vector<128x32xf32>
    %cst_25 = arith.constant dense<0.000000e+00> : vector<128x128xf32>
    %66 = tpu.matmul %65, %64, %cst_25 {dimension_numbers = #tpu.dot_dimension_numbers<[1], [0], [0], [1], [0, 0, 1, 1], [], []>} : vector<128x32xf32>, vector<32x128xf32>, vector<128x128xf32> -> vector<128x128xf32>
    %c0_26 = arith.constant 0 : index
    %c0_27 = arith.constant 0 : index
    %67 = vector.load %arg7[%c0_26, %c0_27] : memref<128x1xf32, #tpu.memory_space<vmem>>, vector<128x1xf32>
    %68 = vector.broadcast %67 : vector<128x1xf32> to vector<128x128xf32>
    %69 = arith.addf %66, %68 : vector<128x128xf32>
    %c0_28 = arith.constant 0 : index
    %c0_29 = arith.constant 0 : index
    %70 = vector.load %arg8[%c0_28, %c0_29] : memref<128x128xf32, #tpu.memory_space<vmem>>, vector<128x128xf32>
    tpu.vector_store %arg8[%c0_28, %c0_29], %69 {strides = array<i32>} : memref<128x128xf32, #tpu.memory_space<vmem>>, vector<128x128xf32>,
    return
  }
  func.func @transform_0(%arg0: i32) -> (i32, i32) {
    %c0_i32 = arith.constant 0 : i32
    %c0_i32_0 = arith.constant 0 : i32
    return %c0_i32, %arg0 : i32, i32
  }
  func.func @transform_1(%arg0: i32) -> (i32, i32) {
    %c0_i32 = arith.constant 0 : i32
    %c0_i32_0 = arith.constant 0 : i32
    %c0_i32_1 = arith.constant 0 : i32
    return %c0_i32, %c0_i32_0 : i32, i32
  }
  func.func @transform_2(%arg0: i32) -> (i32, i32) {
    %c0_i32 = arith.constant 0 : i32
    %c0_i32_0 = arith.constant 0 : i32
    %c0_i32_1 = arith.constant 0 : i32
    return %c0_i32, %c0_i32_0 : i32, i32
  }
  func.func @transform_3(%arg0: i32) -> (i32, i32, i32) {
    %c0_i32 = arith.constant 0 : i32
    %c0_i32_0 = arith.constant 0 : i32
    %c0_i32_1 = arith.constant 0 : i32
    %c0_i32_2 = arith.constant 0 : i32
    return %c0_i32, %c0_i32_0, %c0_i32_1 : i32, i32, i32
  }
  func.func @transform_4(%arg0: i32) -> (i32, i32, i32) {
    %c0_i32 = arith.constant 0 : i32
    %c0_i32_0 = arith.constant 0 : i32
    %c0_i32_1 = arith.constant 0 : i32
    %c0_i32_2 = arith.constant 0 : i32
    return %c0_i32, %c0_i32_0, %c0_i32_1 : i32, i32, i32
  }
  func.func @transform_5(%arg0: i32) -> (i32, i32) {
    %c0_i32 = arith.constant 0 : i32
    %c0_i32_0 = arith.constant 0 : i32
    %c0_i32_1 = arith.constant 0 : i32
    return %c0_i32, %c0_i32_0 : i32, i32
  }
  func.func @transform_6(%arg0: i32) -> (i32, i32) {
    %c0_i32 = arith.constant 0 : i32
    %c0_i32_0 = arith.constant 0 : i32
    %c0_i32_1 = arith.constant 0 : i32
    return %c0_i32, %c0_i32_0 : i32, i32
  }
  func.func @transform_7(%arg0: i32) -> (i32, i32) {
    %c0_i32 = arith.constant 0 : i32
    %c0_i32_0 = arith.constant 0 : i32
    return %c0_i32, %arg0 : i32, i32
  }
}

</mosaic_0001>

<bundles_post_ra>
// kernel: tpu_custom_call.1
= control target key start
LH: loop header
LB: loop body
LE: loop exit
PB: predicated region body
PF: predicated region fallthrough
CT: control target
= control target key end

     0   :  { %v1936_v3 = vmov 0   ;;  %vm59_vm0 = vcmask 261120   ;;  %s3574_s0 = inlined_call_operand.vmem [shape: f32[32,128], index: 0, kind: input, shape index: {}]   ;;  %s3575_s1 = inlined_call_operand.vmem [shape: f32[32,32], index: 1, kind: input, shape index: {}]   ;;  %s3576_s2 = inlined_call_operand.vmem [shape: f32[32,1], index: 2, kind: input, shape index: {}]   ;;  %s3577_s3 = inlined_call_operand.vmem [shape: f32[8,32,1], index: 3, kind: input, shape index: {}]   ;;  %s3578_s4 = inlined_call_operand.vmem [shape: f32[8,32,1], index: 4, kind: input, shape index: {}]   ;;  %s3579_s5 = inlined_call_operand.vmem [shape: f32[128,32], index: 5, kind: input, shape index: {}]   ;;  %s3580_s6 = inlined_call_operand.vmem [shape: f32[128,1], index: 6, kind: input, shape index: {}]   ;;  %s3581_s7 = inlined_call_operand.hbm [shape: f32[128,128], index: 7, kind: output, shape index: {}]  }
   0x1   :  { %v34_v0 = vld [vmem:[%s3574_s0 + $0x18] sm:$0xff]  ;;  %v37_v1 = vld [vmem:[%s3576_s2 + $0x10] sm:$0xff]  ;;  %v35_v2 = vld [vmem:[%s3576_s2] sm:$0xff]  ;;  %1889 = vset.pattern.permute.xlu1 %v1936_v3  ;;  %1888 = vset.pattern.permute.xlu0 %v1936_v3 }
   0x2   :  { %v33_v4 = vld [vmem:[%s3574_s0 + $0x10] sm:$0xff]  ;;  %1830 = vmatprep.subr.mxu0 %v34_v0  ;;  %51 = vperm.xlu1 %1889, %v37_v1   ;;  %v27_v5 = vld [vmem:[%s3575_s1] sm:$0xff]  ;;  %v32_v6 = vld [vmem:[%s3574_s0 + $0x8] sm:$0xff] }
   0x3   :  { %41 = vperm.xlu0 %1888, %v35_v2   ;;  %1831 = vmatpush3.msra.mxu0 %v34_v0  ;;  %v157_v7 = vld [vmem:[%s3577_s3] sm:$0xff]  ;;  %v36_v8 = vld [vmem:[%s3576_s2 + $0x8] sm:$0xff]  ;;  %v29_v13 = vld [vmem:[%s3575_s1 + $0x10] sm:$0xff] }
   0x4   :  { %1832 = vmatprep.subr.mxu0 %v33_v4  ;;  %1838 = vmatprep.mubr.msk.f32.mxu0 %vm59_vm0, %v27_v5  ;;  %v31_v9 = vld [vmem:[%s3574_s0] sm:$0xff]  ;;  %v28_v10 = vld [vmem:[%s3575_s1 + $0x8] sm:$0xff]  ;;  %v30_v14 = vld [vmem:[%s3575_s1 + $0x18] sm:$0xff] }
   0x5   :  { %1833 = vmatpush3.msra.mxu0 %v33_v4  ;;  %v161_v11 = vld [vmem:[%s3577_s3 + $0x20] sm:$0xff]  ;;  %v158_v12 = vld [vmem:[%s3577_s3 + $0x8] sm:$0xff]  ;;  %v38_v15 = vld [vmem:[%s3576_s2 + $0x18] sm:$0xff] }
   0x6   :  { %1834 = vmatprep.subr.mxu0 %v32_v6  ;;  %191 = vperm.xlu1 %1889, %v157_v7   ;;  %v162_v16 = vld [vmem:[%s3577_s3 + $0x28] sm:$0xff]  ;;  %v163_v17 = vld [vmem:[%s3577_s3 + $0x30] sm:$0xff]  ;;  %v165_v20 = vld [vmem:[%s3577_s3 + $0x40] sm:$0xff] }
   0x7   :  { %46 = vperm.xlu0 %1888, %v36_v8   ;;  %1835 = vmatpush3.msra.mxu0 %v32_v6  ;;  %v159_v18 = vld [vmem:[%s3577_s3 + $0x10] sm:$0xff]  ;;  %v166_v19 = vld [vmem:[%s3577_s3 + $0x48] sm:$0xff]  ;;  %v381_v22 = vld [vmem:[%s3578_s4] sm:$0xff] }
   0x8   :  { %1836 = vmatprep.subr.mxu0 %v31_v9  ;;  %v382_v21 = vld [vmem:[%s3578_s4 + $0x8] sm:$0xff]  ;;  %v385_v24 = vld [vmem:[%s3578_s4 + $0x20] sm:$0xff] }
   0x9   :  { %1837 = vmatpush3.msra.mxu0 %v31_v9  ;;  %v386_v23 = vld [vmem:[%s3578_s4 + $0x28] sm:$0xff] }
   0xa   :  { %1839 = vmatmul.mubr.msk.f32.vlgmr.msra.gmra.mxu0 %vm59_vm0, %v28_v10  ;;  %211 = vperm.xlu1 %1889, %v161_v11  }
   0xb   :  { %196 = vperm.xlu0 %1888, %v158_v12   ;;  %1841 = vmatprep.mubr.msk.f32.mxu0 %vm59_vm0, %v29_v13 }
   0xe   :  { %1842 = vmatmul.mubr.msk.f32.gmra.mxu0 %vm59_vm0, %v30_v14  ;;  %56 = vperm.xlu1 %1889, %v38_v15  }
   0xf   :  { %216 = vperm.xlu0 %1888, %v162_v16  }
  0x12   :  { %221 = vperm.xlu1 %1889, %v163_v17  }
  0x13   :  { %201 = vperm.xlu0 %1888, %v159_v18  }
  0x16   :  { %236 = vperm.xlu1 %1889, %v166_v19  }
  0x17   :  { %231 = vperm.xlu0 %1888, %v165_v20  }
  0x1a   :  { %420 = vperm.xlu1 %1889, %v382_v21  }
  0x1b   :  { %415 = vperm.xlu0 %1888, %v381_v22  }
  0x1c   :  { %12 = vsyncpa [#allocation3], 0  ;;  %v164_v25 = vld [vmem:[%s3577_s3 + $0x38] sm:$0xff]  ;;  %v169_v27 = vld [vmem:[%s3577_s3 + $0x60] sm:$0xff] }
  0x1d   :  { %v160_v26 = vld [vmem:[%s3577_s3 + $0x18] sm:$0xff]  ;;  %v167_v28 = vld [vmem:[%s3577_s3 + $0x50] sm:$0xff]  ;;  %v170_v30 = vld [vmem:[%s3577_s3 + $0x68] sm:$0xff] }
  0x1e   :  { %440 = vperm.xlu1 %1889, %v386_v23   ;;  %v383_v29 = vld [vmem:[%s3578_s4 + $0x10] sm:$0xff]  ;;  %v389_v31 = vld [vmem:[%s3578_s4 + $0x40] sm:$0xff]  ;;  %v168_v33 = vld [vmem:[%s3577_s3 + $0x58] sm:$0xff] }
  0x1f   :  { %435 = vperm.xlu0 %1888, %v385_v24   ;;  %v387_v32 = vld [vmem:[%s3578_s4 + $0x30] sm:$0xff]  ;;  %v390_v34 = vld [vmem:[%s3578_s4 + $0x48] sm:$0xff]  ;;  %v173_v35 = vld [vmem:[%s3577_s3 + $0x80] sm:$0xff] }
  0x20   :  { %v171_v36 = vld [vmem:[%s3577_s3 + $0x70] sm:$0xff]  ;;  %v384_v37 = vld [vmem:[%s3578_s4 + $0x18] sm:$0xff]  ;;  %v174_v38 = vld [vmem:[%s3577_s3 + $0x88] sm:$0xff] }
  0x21   :  { %v391_v39 = vld [vmem:[%s3578_s4 + $0x50] sm:$0xff]  ;;  %v388_v40 = vld [vmem:[%s3578_s4 + $0x38] sm:$0xff]  ;;  %v394_v41 = vld [vmem:[%s3578_s4 + $0x68] sm:$0xff] }
  0x22   :  { %226 = vperm.xlu1 %1889, %v164_v25   ;;  %v393_v42 = vld [vmem:[%s3578_s4 + $0x60] sm:$0xff]  ;;  %v175_v43 = vld [vmem:[%s3577_s3 + $0x90] sm:$0xff]  ;;  %v172_v44 = vld [vmem:[%s3577_s3 + $0x78] sm:$0xff] }
  0x23   :  { %206 = vperm.xlu0 %1888, %v160_v26   ;;  %v178_v45 = vld [vmem:[%s3577_s3 + $0xa8] sm:$0xff]  ;;  %v177_v46 = vld [vmem:[%s3577_s3 + $0xa0] sm:$0xff]  ;;  %v395_v47 = vld [vmem:[%s3578_s4 + $0x70] sm:$0xff] }
  0x24   :  { %v392_v48 = vld [vmem:[%s3578_s4 + $0x58] sm:$0xff]  ;;  %v398_v49 = vld [vmem:[%s3578_s4 + $0x88] sm:$0xff]  ;;  %v397_v50 = vld [vmem:[%s3578_s4 + $0x80] sm:$0xff] }
  0x25   :  { %v179_v51 = vld [vmem:[%s3577_s3 + $0xb0] sm:$0xff]  ;;  %v176_v52 = vld [vmem:[%s3577_s3 + $0x98] sm:$0xff]  ;;  %v182_v53 = vld [vmem:[%s3577_s3 + $0xc8] sm:$0xff] }
  0x26   :  { %251 = vperm.xlu1 %1889, %v169_v27   ;;  %v181_v54 = vld [vmem:[%s3577_s3 + $0xc0] sm:$0xff]  ;;  %v399_v55 = vld [vmem:[%s3578_s4 + $0x90] sm:$0xff]  ;;  %v396_v56 = vld [vmem:[%s3578_s4 + $0x78] sm:$0xff] }
  0x27   :  { %241 = vperm.xlu0 %1888, %v167_v28   ;;  %v402_v57 = vld [vmem:[%s3578_s4 + $0xa8] sm:$0xff]  ;;  %v401_v58 = vld [vmem:[%s3578_s4 + $0xa0] sm:$0xff]  ;;  %v183_v59 = vld [vmem:[%s3577_s3 + $0xd0] sm:$0xff] }
  0x28   :  { %v180_v60 = vld [vmem:[%s3577_s3 + $0xb8] sm:$0xff]  ;;  %v186_v61 = vld [vmem:[%s3577_s3 + $0xe8] sm:$0xff]  ;;  %v185_v62 = vld [vmem:[%s3577_s3 + $0xe0] sm:$0xff] }
  0x29   :  { %v403_v63 = vld [vmem:[%s3578_s4 + $0xb0] sm:$0xff]  ;;  %v400_v0 = vld [vmem:[%s3578_s4 + $0x98] sm:$0xff]  ;;  %v406_v1 = vld [vmem:[%s3578_s4 + $0xc8] sm:$0xff] }
  0x2a   :  { %425 = vperm.xlu1 %1889, %v383_v29   ;;  %v405_v2 = vld [vmem:[%s3578_s4 + $0xc0] sm:$0xff]  ;;  %v187_v3 = vld [vmem:[%s3577_s3 + $0xf0] sm:$0xff]  ;;  %v184_v4 = vld [vmem:[%s3577_s3 + $0xd8] sm:$0xff] }
  0x2b   :  { %256 = vperm.xlu0 %1888, %v170_v30   ;;  %v407_v5 = vld [vmem:[%s3578_s4 + $0xd0] sm:$0xff]  ;;  %v404_v6 = vld [vmem:[%s3578_s4 + $0xb8] sm:$0xff]  ;;  %v410_v7 = vld [vmem:[%s3578_s4 + $0xe8] sm:$0xff] }
  0x2c   :  { %v409_v8 = vld [vmem:[%s3578_s4 + $0xe0] sm:$0xff]  ;;  %v408_v11 = vld [vmem:[%s3578_s4 + $0xd8] sm:$0xff]  ;;  %v411_v16 = vld [vmem:[%s3578_s4 + $0xf0] sm:$0xff] }
  0x2d   :  { %v188_v12 = vld [vmem:[%s3577_s3 + $0xf8] sm:$0xff]  ;;  %v1462_v19 = vld [vmem:[%s3580_s6 + $0x8] sm:$0xff]  ;;  %v1461_v20 = vld [vmem:[%s3580_s6] sm:$0xff] }
  0x2e   :  { %455 = vperm.xlu1 %1889, %v389_v31   ;;  %v412_v15 = vld [vmem:[%s3578_s4 + $0xf8] sm:$0xff]  ;;  %v1463_v24 = vld [vmem:[%s3580_s6 + $0x10] sm:$0xff]  ;;  %v1466_v27 = vld [vmem:[%s3580_s6 + $0x28] sm:$0xff] }
  0x2f   :  { %445 = vperm.xlu0 %1888, %v387_v32   ;;  %v1464_v23 = vld [vmem:[%s3580_s6 + $0x18] sm:$0xff]  ;;  %v1465_v28 = vld [vmem:[%s3580_s6 + $0x20] sm:$0xff]  ;;  %v1467_v32 = vld [vmem:[%s3580_s6 + $0x30] sm:$0xff] }
  0x30   :  { %v1468_v31 = vld [vmem:[%s3580_s6 + $0x38] sm:$0xff] }
  0x32   :  { %246 = vperm.xlu1 %1889, %v168_v33  }
  0x33   :  { %460 = vperm.xlu0 %1888, %v390_v34  }
  0x36   :  { %271 = vperm.xlu1 %1889, %v173_v35   ;;  %v1470_v35 = vld [vmem:[%s3580_s6 + $0x48] sm:$0xff] }
  0x37   :  { %261 = vperm.xlu0 %1888, %v171_v36   ;;  %v1469_v36 = vld [vmem:[%s3580_s6 + $0x40] sm:$0xff] }
  0x3a   :  { %430 = vperm.xlu1 %1889, %v384_v37  }
  0x3b   :  { %276 = vperm.xlu0 %1888, %v174_v38  }
  0x3e   :  { %465 = vperm.xlu1 %1889, %v391_v39   ;;  %v1472_v39 = vld [vmem:[%s3580_s6 + $0x58] sm:$0xff] }
  0x3f   :  { %450 = vperm.xlu0 %1888, %v388_v40   ;;  %v1471_v40 = vld [vmem:[%s3580_s6 + $0x50] sm:$0xff] }
  0x42   :  { %480 = vperm.xlu1 %1889, %v394_v41  }
  0x43   :  { %475 = vperm.xlu0 %1888, %v393_v42  }
  0x46   :  { %281 = vperm.xlu1 %1889, %v175_v43   ;;  %v1474_v43 = vld [vmem:[%s3580_s6 + $0x68] sm:$0xff] }
  0x47   :  { %266 = vperm.xlu0 %1888, %v172_v44   ;;  %v1473_v44 = vld [vmem:[%s3580_s6 + $0x60] sm:$0xff] }
  0x4a   :  { %296 = vperm.xlu1 %1889, %v178_v45  }
  0x4b   :  { %291 = vperm.xlu0 %1888, %v177_v46  }
  0x4e   :  { %485 = vperm.xlu1 %1889, %v395_v47   ;;  %v1476_v47 = vld [vmem:[%s3580_s6 + $0x78] sm:$0xff] }
  0x4f   :  { %470 = vperm.xlu0 %1888, %v392_v48   ;;  %v1475_v48 = vld [vmem:[%s3580_s6 + $0x70] sm:$0xff] }
  0x52   :  { %500 = vperm.xlu1 %1889, %v398_v49  }
  0x53   :  { %495 = vperm.xlu0 %1888, %v397_v50  }
  0x56   :  { %301 = vperm.xlu1 %1889, %v179_v51  }
  0x57   :  { %286 = vperm.xlu0 %1888, %v176_v52  }
  0x5a   :  { %316 = vperm.xlu1 %1889, %v182_v53  }
  0x5b   :  { %311 = vperm.xlu0 %1888, %v181_v54  }
  0x5e   :  { %505 = vperm.xlu1 %1889, %v399_v55  }
  0x5f   :  { %490 = vperm.xlu0 %1888, %v396_v56  }
  0x62   :  { %520 = vperm.xlu1 %1889, %v402_v57  }
  0x63   :  { %515 = vperm.xlu0 %1888, %v401_v58  }
  0x66   :  { %321 = vperm.xlu1 %1889, %v183_v59  }
  0x67   :  { %306 = vperm.xlu0 %1888, %v180_v60  }
  0x6a   :  { %336 = vperm.xlu1 %1889, %v186_v61  }
  0x6b   :  { %331 = vperm.xlu0 %1888, %v185_v62  }
  0x6e   :  { %525 = vperm.xlu1 %1889, %v403_v63  }
  0x6f   :  { %510 = vperm.xlu0 %1888, %v400_v0  }
  0x72   :  { %540 = vperm.xlu1 %1889, %v406_v1  }
  0x73   :  { %535 = vperm.xlu0 %1888, %v405_v2  }
  0x76   :  { %341 = vperm.xlu1 %1889, %v187_v3  }
  0x77   :  { %326 = vperm.xlu0 %1888, %v184_v4  }
  0x7a   :  { %545 = vperm.xlu1 %1889, %v407_v5  }
  0x7b   :  { %530 = vperm.xlu0 %1888, %v404_v6  }
  0x7d   :  { %v2200_v9 = vpop.permute.xlu1 %51 }
  0x7e   :  { %v2202_v10 = vpop.permute.xlu0 %41  ;;  %560 = vperm.xlu1 %1889, %v410_v7  }
  0x7f   :  { %555 = vperm.xlu0 %1888, %v409_v8  }
  0x81   :  { %v2210_v13 = vpop.permute.xlu1 %191 }
  0x82   :  { %v2212_v14 = vpop.permute.xlu0 %46  ;;  %550 = vperm.xlu1 %1889, %v408_v11  }
  0x83   :  { %346 = vperm.xlu0 %1888, %v188_v12  }
  0x85   :  { %v2220_v17 = vpop.permute.xlu1 %211 }
  0x86   :  { %v2222_v18 = vpop.permute.xlu0 %196  ;;  %570 = vperm.xlu1 %1889, %v412_v15  }
  0x87   :  { %565 = vperm.xlu0 %1888, %v411_v16  }
  0x89   :  { %v2230_v21 = vpop.permute.xlu1 %56 }
  0x8a   :  { %v2232_v22 = vpop.permute.xlu0 %216  ;;  %1484 = vperm.xlu1 %1889, %v1462_v19  }
  0x8b   :  { %1479 = vperm.xlu0 %1888, %v1461_v20  }
  0x8d   :  { %v2240_v25 = vpop.permute.xlu1 %221 }
  0x8e   :  { %v2242_v26 = vpop.permute.xlu0 %201  ;;  %1494 = vperm.xlu1 %1889, %v1464_v23  }
  0x8f   :  { %1489 = vperm.xlu0 %1888, %v1463_v24  }
  0x91   :  { %v2250_v29 = vpop.permute.xlu1 %236 }
  0x92   :  { %v2252_v30 = vpop.permute.xlu0 %231  ;;  %1504 = vperm.xlu1 %1889, %v1466_v27  }
  0x93   :  { %1499 = vperm.xlu0 %1888, %v1465_v28  }
  0x95   :  { %v2260_v33 = vpop.permute.xlu1 %420 }
  0x96   :  { %3718 = vst [vmem:[#allocation5_spill] sm:$0xff] %v2260_v33  ;;  %v2262_v34 = vpop.permute.xlu0 %415  ;;  %1514 = vperm.xlu1 %1889, %v1468_v31  }
  0x97   :  { %3719 = vst [vmem:[#allocation6_spill] sm:$0xff] %v2262_v34  ;;  %1509 = vperm.xlu0 %1888, %v1467_v32  }
  0x99   :  { %v2270_v37 = vpop.permute.xlu1 %440 }
  0x9a   :  { %3720 = vst [vmem:[#allocation7_spill] sm:$0xff] %v2270_v37  ;;  %v2272_v38 = vpop.permute.xlu0 %435  ;;  %1524 = vperm.xlu1 %1889, %v1470_v35  }
  0x9b   :  { %3721 = vst [vmem:[#allocation8_spill] sm:$0xff] %v2272_v38  ;;  %1519 = vperm.xlu0 %1888, %v1469_v36  }
  0x9d   :  { %v2280_v41 = vpop.permute.xlu1 %226 }
  0x9e   :  { %v2282_v42 = vpop.permute.xlu0 %206  ;;  %1534 = vperm.xlu1 %1889, %v1472_v39  }
  0x9f   :  { %1529 = vperm.xlu0 %1888, %v1471_v40  }
  0xa1   :  { %v252_v45 = vpop.permute.xlu1 %251 }
  0xa2   :  { %v242_v46 = vpop.permute.xlu0 %241  ;;  %1544 = vperm.xlu1 %1889, %v1474_v43  }
  0xa3   :  { %1539 = vperm.xlu0 %1888, %v1473_v44  }
  0xa5   :  { %v2296_v49 = vpop.permute.xlu1 %425 }
  0xa6   :  { %3722 = vst [vmem:[#allocation9_spill] sm:$0xff] %v2296_v49  ;;  %v257_v50 = vpop.permute.xlu0 %256  ;;  %1554 = vperm.xlu1 %1889, %v1476_v47  }
  0xa7   :  { %1549 = vperm.xlu0 %1888, %v1475_v48  }
  0xa9   :  { %v2298_v51 = vpop.permute.xlu1 %455 }
  0xaa   :  { %3723 = vst [vmem:[#allocation10_spill] sm:$0xff] %v2298_v51  ;;  %v2300_v52 = vpop.permute.xlu0 %445 }
  0xab   :  { %3724 = vst [vmem:[#allocation11_spill] sm:$0xff] %v2300_v52 }
  0xad   :  { %v247_v53 = vpop.permute.xlu1 %246 }
  0xae   :  { %v2302_v54 = vpop.permute.xlu0 %460 }
  0xaf   :  { %3725 = vst [vmem:[#allocation12_spill] sm:$0xff] %v2302_v54 }
  0xb1   :  { %v272_v55 = vpop.permute.xlu1 %271 }
  0xb2   :  { %v262_v56 = vpop.permute.xlu0 %261 }
  0xb5   :  { %v2304_v57 = vpop.permute.xlu1 %430 }
  0xb6   :  { %3726 = vst [vmem:[#allocation13_spill] sm:$0xff] %v2304_v57  ;;  %v277_v58 = vpop.permute.xlu0 %276 }
  0xb9   :  { %v2306_v59 = vpop.permute.xlu1 %465 }
  0xba   :  { %3727 = vst [vmem:[#allocation14_spill] sm:$0xff] %v2306_v59  ;;  %v2308_v60 = vpop.permute.xlu0 %450 }
  0xbb   :  { %3728 = vst [vmem:[#allocation15_spill] sm:$0xff] %v2308_v60 }
  0xbd   :  { %v2310_v61 = vpop.permute.xlu1 %480 }
  0xbe   :  { %3729 = vst [vmem:[#allocation16_spill] sm:$0xff] %v2310_v61  ;;  %v2312_v62 = vpop.permute.xlu0 %475 }
  0xbf   :  { %3730 = vst [vmem:[#allocation17_spill] sm:$0xff] %v2312_v62 }
  0xc1   :  { %v2314_v63 = vpop.permute.xlu1 %281 }
  0xc2   :  { %v267_v0 = vpop.permute.xlu0 %266 }
  0xc5   :  { %v2316_v1 = vpop.permute.xlu1 %296 }
  0xc6   :  { %v2318_v2 = vpop.permute.xlu0 %291 }
  0xc9   :  { %v2320_v3 = vpop.permute.xlu1 %485 }
  0xca   :  { %3731 = vst [vmem:[#allocation18_spill] sm:$0xff] %v2320_v3  ;;  %v2322_v4 = vpop.permute.xlu0 %470  ;;  %v1840_v5 = vpop.f32.mrf.mxu0 }
  0xcb   :  { %3732 = vst [vmem:[#allocation19_spill] sm:$0xff] %v2322_v4  ;;  %v2325_v6 = vadd.f32 %v1840_v5, %v2212_v14 }
  0xcc   :  { %v138_v7 = vpop.f32.mrf.mxu0 }
  0xcd   :  { %v2328_v8 = vadd.f32 %v138_v7, %v2202_v10  ;;  %v2330_v11 = vpop.permute.xlu1 %500  ;;  %v2333_v12 = vadd.f32 %v277_v58, %v2325_v6  ;;  %v2339_v19 = vadd.f32 %v2222_v18, %v2325_v6  ;;  %v2347_v10 = vadd.f32 %v2232_v22, %v2325_v6 }
  0xce   :  { %3733 = vst [vmem:[#allocation20_spill] sm:$0xff] %v2330_v11  ;;  %v2335_v15 = vpop.permute.xlu0 %495  ;;  %v1843_v16 = vpop.f32.mrf.mxu0  ;;  %v2351_v20 = vadd.f32 %v2250_v29, %v2325_v6  ;;  %v2372_v29 = vadd.f32 %v257_v50, %v2325_v6 }
  0xcf   :  { %3734 = vst [vmem:[#allocation21_spill] sm:$0xff] %v2333_v12  ;;  %3735 = vst [vmem:[#allocation22_spill] sm:$0xff] %v2335_v15  ;;  %v2343_v14 = vadd.f32 %v2210_v13, %v2328_v8  ;;  %v2355_v23 = vadd.f32 %v2220_v17, %v2328_v8  ;;  %v2358_v24 = vadd.f32 %v272_v55, %v2328_v8 }
  0xd0   :  { %v148_v18 = vpop.f32.mrf.mxu0  ;;  %v2362_v13 = vadd.f32 %v2252_v30, %v2328_v8  ;;  %v590_v22 = vmul.f32 %v2330_v11, %v2333_v12  ;;  %v2379_v30 = vadd.f32 %v1843_v16, %v2230_v21  ;;  %v2384_v35 = vadd.f32 %v252_v45, %v2328_v8 }
  0xd1   :  { %v2367_v27 = vadd.f32 %v148_v18, %v2200_v9  ;;  %v2369_v28 = vpop.permute.xlu1 %301  ;;  %v573_v17 = vmul.f32 %v2262_v34, %v2343_v14  ;;  %v589_v31 = vmul.f32 %v2335_v15, %v2358_v24  ;;  %v577_v9 = vmul.f32 %v2272_v38, %v2355_v23 }
  0xd2   :  { %v2381_v32 = vpop.permute.xlu0 %286  ;;  %v574_v21 = vmul.f32 %v2260_v33, %v2339_v19  ;;  %v578_v43 = vmul.f32 %v2270_v37, %v2347_v10  ;;  %v582_v44 = vmul.f32 %v2302_v54, %v2351_v20  ;;  %v586_v48 = vmul.f32 %v2310_v61, %v2372_v29 }
  0xd3   :  { %v2390_v36 = vadd.f32 %v2242_v26, %v2367_v27  ;;  %v2394_v39 = vadd.f32 %v2240_v25, %v2367_v27  ;;  %v2397_v40 = vadd.f32 %v242_v46, %v2367_v27  ;;  %v2405_v45 = vadd.f32 %v590_v22, %v589_v31 }
  0xd4   :  { %v581_v26 = vmul.f32 %v2298_v51, %v2362_v13  ;;  %v605_v50 = vadd.f32 %v574_v21, %v573_v17  ;;  %v2417_v58 = vadd.f32 %v2282_v42, %v2379_v30  ;;  %v2421_v5 = vadd.f32 %v2280_v41, %v2379_v30 }
  0xd5   :  { %v575_v25 = vmul.f32 %v2296_v49, %v2390_v36  ;;  %v579_v46 = vmul.f32 %v2300_v52, %v2394_v39  ;;  %v317_v47 = vpop.permute.xlu1 %316  ;;  %v2424_v7 = vadd.f32 %v247_v53, %v2379_v30  ;;  %v614_v16 = vadd.f32 %v578_v43, %v577_v9 }
  0xd6   :  { %v312_v55 = vpop.permute.xlu0 %311  ;;  %v583_v18 = vmul.f32 %v2306_v59, %v2397_v40  ;;  %v2429_v22 = vadd.f32 %v262_v56, %v2367_v27  ;;  %v585_v17 = vmul.f32 %v2312_v62, %v2384_v35  ;;  %v2434_v42 = vadd.f32 %v267_v0, %v2379_v30 }
  0xd7   :  { %v576_v41 = vmul.f32 %v2304_v57, %v2417_v58  ;;  %v580_v53 = vmul.f32 %v2308_v60, %v2421_v5  ;;  %v606_v31 = vadd.f32 %v605_v50, %v575_v25  ;;  %v615_v56 = vadd.f32 %v614_v16, %v579_v46 }
  0xd8   :  { %v587_v21 = vmul.f32 %v2320_v3, %v2429_v22  ;;  %v623_v43 = vadd.f32 %v582_v44, %v581_v26  ;;  %v632_v11 = vadd.f32 %v586_v48, %v585_v17  ;;  %v584_v0 = vmul.f32 %v2322_v4, %v2424_v7 }
  0xd9   :  { %v2440_v9 = vpop.permute.xlu1 %505  ;;  %v607_v61 = vadd.f32 %v606_v31, %v576_v41  ;;  %v616_v59 = vadd.f32 %v615_v56, %v580_v53  ;;  %v2456_v41 = vadd.f32 %v2314_v63, %v2367_v27 }
  0xda   :  { %3736 = vst [vmem:[#allocation23_spill] sm:$0xff] %v2440_v9  ;;  %v2444_v15 = vpop.permute.xlu0 %490  ;;  %v624_v54 = vadd.f32 %v623_v43, %v583_v18  ;;  %v633_v25 = vadd.f32 %v632_v11, %v587_v21  ;;  %v2478_v43 = vadd.f32 %v2369_v28, %v2367_v27 }
  0xdb   :  { %3737 = vst [vmem:[#allocation24_spill] sm:$0xff] %v2444_v15  ;;  %v588_v62 = vmul.f32 %v2444_v15, %v2434_v42  ;;  %v608_v50 = vrot.slane %v607_v61, 4  ;;  %v617_v51 = vrot.slane %v616_v59, 4  ;;  %3740 = vst [vmem:[#allocation27_spill] sm:$0xff] %v2456_v41 }
  0xdc   :  { %v625_v60 = vadd.f32 %v624_v54, %v584_v0 }
  0xdd   :  { %v634_v52 = vadd.f32 %v633_v25, %v588_v62  ;;  %v2450_v3 = vpop.permute.xlu1 %520  ;;  %v609_v44 = vadd.f32 %v608_v50, %v607_v61  ;;  %v618_v46 = vadd.f32 %v617_v51, %v616_v59  ;;  %v2462_v62 = vadd.f32 %v2316_v1, %v2325_v6 }
  0xde   :  { %3738 = vst [vmem:[#allocation25_spill] sm:$0xff] %v2450_v3  ;;  %v2452_v26 = vpop.permute.xlu0 %515  ;;  %v626_v48 = vrot.slane %v625_v60, 4  ;;  %v2466_v51 = vadd.f32 %v2318_v2, %v2328_v8  ;;  %v591_v61 = vmul.f32 %v2440_v9, %v2456_v41 }
  0xdf   :  { %3739 = vst [vmem:[#allocation26_spill] sm:$0xff] %v2452_v26  ;;  %v635_v16 = vrot.slane %v634_v52, 4  ;;  %v610_v17 = vrot.slane %v609_v44, 2  ;;  %v619_v53 = vrot.slane %v618_v46, 2  ;;  %3741 = vst [vmem:[#allocation28_spill] sm:$0xff] %v2462_v62  ;;  %v594_v56 = vmul.f32 %v2450_v3, %v2462_v62 }
  0xe0   :  { %v627_v18 = vadd.f32 %v626_v48, %v625_v60  ;;  %3742 = vst [vmem:[#allocation29_spill] sm:$0xff] %v2466_v51  ;;  %v593_v1 = vmul.f32 %v2452_v26, %v2466_v51  ;;  %v2490_v48 = vadd.f32 %v312_v55, %v2328_v8  ;;  %v2497_v28 = vadd.f32 %v2405_v45, %v591_v61 }
  0xe1   :  { %v636_v11 = vadd.f32 %v635_v16, %v634_v52  ;;  %v2458_v31 = vpop.permute.xlu1 %321  ;;  %v611_v54 = vadd.f32 %v610_v17, %v609_v44  ;;  %v620_v63 = vadd.f32 %v619_v53, %v618_v46  ;;  %v2484_v44 = vadd.f32 %v2381_v32, %v2379_v30 }
  0xe2   :  { %v2468_v59 = vpop.permute.xlu0 %306  ;;  %v628_v21 = vrot.slane %v627_v18, 2  ;;  %v2487_v46 = vadd.f32 %v317_v47, %v2325_v6 }
  0xe3   :  { %v637_v60 = vrot.slane %v636_v11, 2  ;;  %v612_v52 = vrot.slane %v611_v54, 1  ;;  %v621_v2 = vrot.slane %v620_v63, 1 }
  0xe4   :  { %v629_v0 = vadd.f32 %v628_v21, %v627_v18 }
  0xe5   :  { %v638_v25 = vadd.f32 %v637_v60, %v636_v11  ;;  %v2480_v50 = vpop.permute.xlu1 %336  ;;  %v2492_v16 = vadd.f32 %v612_v52, %v611_v54  ;;  %v2499_v53 = vadd.f32 %v621_v2, %v620_v63  ;;  %v2507_v54 = vadd.f32 %v594_v56, %v593_v1 }
  0xe6   :  { %v2494_v17 = vpop.permute.xlu0 %331  ;;  %v630_v18 = vrot.slane %v629_v0, 1 }
  0xe7   :  { %v639_v11 = vrot.slane %v638_v25, 1  ;;  %v677_v32 = vmul.f32 %v2492_v16, %v2343_v14  ;;  %v678_v47 = vmul.f32 %v2492_v16, %v2339_v19  ;;  %v680_v55 = vmul.f32 %v2492_v16, %v2417_v58 }
  0xe8   :  { %v2509_v21 = vadd.f32 %v630_v18, %v629_v0  ;;  %v681_v45 = vmul.f32 %v2499_v53, %v2355_v23  ;;  %v682_v61 = vmul.f32 %v2499_v53, %v2347_v10  ;;  %v684_v52 = vmul.f32 %v2499_v53, %v2421_v5 }
  0xe9   :  { %v640_v60 = vadd.f32 %v639_v11, %v638_v25  ;;  %v2515_v63 = vpop.permute.xlu1 %525  ;;  %v709_v2 = vmax.f32 %v677_v32, 0.0  ;;  %v710_v3 = vmax.f32 %v678_v47, 0.0  ;;  %v712_v26 = vmax.f32 %v680_v55, 0.0 }
  0xea   :  { %3743 = vst [vmem:[#allocation30_spill] sm:$0xff] %v2515_v63  ;;  %v2519_v9 = vpop.permute.xlu0 %510  ;;  %v685_v56 = vmul.f32 %v2509_v21, %v2362_v13  ;;  %v686_v1 = vmul.f32 %v2509_v21, %v2351_v20  ;;  %v688_v0 = vmul.f32 %v2509_v21, %v2424_v7  ;;  %v713_v47 = vmax.f32 %v681_v45, 0.0 }
  0xeb   :  { %3744 = vst [vmem:[#allocation31_spill] sm:$0xff] %v2519_v9  ;;  %v689_v25 = vmul.f32 %v640_v60, %v2384_v35  ;;  %v690_v18 = vmul.f32 %v640_v60, %v2372_v29  ;;  %v691_v11 = vmul.f32 %v640_v60, %v2429_v22  ;;  %v692_v32 = vmul.f32 %v640_v60, %v2434_v42 }
  0xec   :  { %v714_v55 = vmax.f32 %v682_v61, 0.0  ;;  %v716_v15 = vmax.f32 %v684_v52, 0.0  ;;  %v717_v4 = vmax.f32 %v685_v56, 0.0  ;;  %v718_v37 = vmax.f32 %v686_v1, 0.0 }
  0xed   :  { %v2531_v38 = vpop.permute.xlu1 %540  ;;  %v720_v57 = vmax.f32 %v688_v0, 0.0  ;;  %v721_v49 = vmax.f32 %v689_v25, 0.0  ;;  %v722_v33 = vmax.f32 %v690_v18, 0.0  ;;  %v723_v34 = vmax.f32 %v691_v11, 0.0 }
  0xee   :  { %3745 = vst [vmem:[#allocation32_spill] sm:$0xff] %v2531_v38  ;;  %v2533_v62 = vpop.permute.xlu0 %535  ;;  %v724_v51 = vmax.f32 %v692_v32, 0.0  ;;  %v2536_v41 = vadd.f32 %v709_v2, %v2343_v14  ;;  %v2539_v12 = vadd.f32 %v710_v3, %v2339_v19  ;;  %v2542_v60 = vadd.f32 %v712_v26, %v2417_v58 }
  0xef   :  { %3746 = vst [vmem:[#allocation33_spill] sm:$0xff] %v2533_v62  ;;  %v2545_v45 = vadd.f32 %v713_v47, %v2355_v23  ;;  %v2548_v61 = vadd.f32 %v714_v55, %v2347_v10  ;;  %v2551_v52 = vadd.f32 %v716_v15, %v2421_v5  ;;  %v2554_v56 = vadd.f32 %v717_v4, %v2362_v13 }
  0xf0   :  { %v2557_v14 = vadd.f32 %v718_v37, %v2351_v20  ;;  %v2560_v3 = vadd.f32 %v720_v57, %v2424_v7  ;;  %v2563_v19 = vadd.f32 %v721_v49, %v2384_v35  ;;  %v2566_v23 = vadd.f32 %v722_v33, %v2372_v29 }
  0xf1   :  { %v2568_v10 = vpop.permute.xlu1 %341  ;;  %v2571_v15 = vadd.f32 %v723_v34, %v2429_v22  ;;  %v2574_v4 = vadd.f32 %v724_v51, %v2434_v42  ;;  %v773_v37 = vmul.f32 %v2536_v41, %v2536_v41  ;;  %v774_v57 = vmul.f32 %v2539_v12, %v2539_v12 }
  0xf2   :  { %v327_v20 = vpop.permute.xlu0 %326  ;;  %v776_v49 = vmul.f32 %v2542_v60, %v2542_v60  ;;  %v777_v33 = vmul.f32 %v2545_v45, %v2545_v45  ;;  %v778_v34 = vmul.f32 %v2548_v61, %v2548_v61  ;;  %v780_v13 = vmul.f32 %v2551_v52, %v2551_v52 }
  0xf3   :  { %v781_v29 = vmul.f32 %v2554_v56, %v2554_v56  ;;  %v782_v35 = vmul.f32 %v2557_v14, %v2557_v14  ;;  %v784_v58 = vmul.f32 %v2560_v3, %v2560_v3  ;;  %v2596_v5 = vadd.f32 %v2458_v31, %v2367_v27 }
  0xf4   :  { %v785_v7 = vmul.f32 %v2563_v19, %v2563_v19  ;;  %v786_v22 = vmul.f32 %v2566_v23, %v2566_v23  ;;  %v788_v42 = vmul.f32 %v2574_v4, %v2574_v4  ;;  %v805_v26 = vadd.f32 %v777_v33, %v773_v37 }
  0xf5   :  { %v2604_v51 = vpop.permute.xlu1 %545  ;;  %v812_v2 = vadd.f32 %v778_v34, %v774_v57  ;;  %v826_v1 = vadd.f32 %v780_v13, %v776_v49  ;;  %v595_v0 = vmul.f32 %v2515_v63, %v2478_v43  ;;  %v592_v31 = vmul.f32 %v2519_v9, %v2484_v44 }
  0xf6   :  { %3747 = vst [vmem:[#allocation34_spill] sm:$0xff] %v2604_v51  ;;  %v2610_v25 = vpop.permute.xlu0 %530  ;;  %v806_v18 = vadd.f32 %v805_v26, %v781_v29  ;;  %v2614_v11 = vadd.f32 %v2468_v59, %v2379_v30  ;;  %v598_v32 = vmul.f32 %v2531_v38, %v2487_v46  ;;  %v597_v47 = vmul.f32 %v2533_v62, %v2490_v48 }
  0xf7   :  { %3748 = vst [vmem:[#allocation35_spill] sm:$0xff] %v2610_v25  ;;  %v813_v55 = vadd.f32 %v812_v2, %v782_v35  ;;  %v827_v37 = vadd.f32 %v826_v1, %v784_v58  ;;  %v643_v57 = vadd.f32 %v2497_v28, %v592_v31  ;;  %v679_v49 = vmul.f32 %v2492_v16, %v2390_v36 }
  0xf8   :  { %v2623_v33 = vadd.f32 %v806_v18, %v785_v7  ;;  %v2627_v34 = vadd.f32 %v2480_v50, %v2325_v6  ;;  %v651_v59 = vadd.f32 %v2507_v54, %v595_v0  ;;  %v599_v13 = vmul.f32 %v2604_v51, %v2596_v5 }
  0xf9   :  { %v2632_v29 = vpop.permute.xlu1 %560  ;;  %v2634_v35 = vadd.f32 %v813_v55, %v786_v22  ;;  %v2636_v58 = vadd.f32 %v827_v37, %v788_v42  ;;  %v644_v28 = vrot.slane %v643_v57, 4  ;;  %v596_v16 = vmul.f32 %v2610_v25, %v2614_v11 }
  0xfa   :  { %3749 = vst [vmem:[#allocation36_spill] sm:$0xff] %v2632_v29  ;;  %v2640_v7 = vpop.permute.xlu0 %555  ;;  %v2644_v6 = vadd.f32 %v2494_v17, %v2328_v8  ;;  %v659_v50 = vadd.f32 %v598_v32, %v597_v47  ;;  %v2647_v54 = vadd.f32 %v327_v20, %v2379_v30  ;;  %v683_v22 = vmul.f32 %v2499_v53, %v2394_v39 }
  0xfb   :  { %3750 = vst [vmem:[#allocation37_spill] sm:$0xff] %v2640_v7  ;;  %v645_v26 = vadd.f32 %v644_v28, %v643_v57  ;;  %v652_v42 = vadd.f32 %v651_v59, %v596_v16  ;;  %v687_v2 = vmul.f32 %v2509_v21, %v2397_v40  ;;  %v711_v1 = vmax.f32 %v679_v49, 0.0 }
  0xfc   :  { %v660_v0 = vadd.f32 %v659_v50, %v599_v13  ;;  %v602_v31 = vmul.f32 %v2632_v29, %v2627_v34  ;;  %v601_v8 = vmul.f32 %v2640_v7, %v2644_v6  ;;  %v715_v20 = vmax.f32 %v683_v22, 0.0  ;;  %v3754_v29 = vld [vmem:[#allocation21_spill] sm:$0xff] }
  0xfd   :  { %v2657_v17 = vpop.permute.xlu1 %550  ;;  %v646_v18 = vrot.slane %v645_v26, 2  ;;  %v653_v32 = vrot.slane %v652_v42, 4  ;;  %v719_v55 = vmax.f32 %v687_v2, 0.0  ;;  %v2662_v21 = vadd.f32 %v711_v1, %v2390_v36 }
  0xfe   :  { %3751 = vst [vmem:[#allocation38_spill] sm:$0xff] %v2657_v17  ;;  %v600_v53 = vmul.f32 %v2657_v17, %v2647_v54  ;;  %v347_v47 = vpop.permute.xlu0 %346  ;;  %v2665_v37 = vadd.f32 %v715_v20, %v2394_v39  ;;  %v787_v28 = vmul.f32 %v2571_v15, %v2571_v15  ;;  %v2674_v16 = vadd.f32 %v2568_v10, %v2367_v27 }
  0xff   :  { %v647_v57 = vadd.f32 %v646_v18, %v645_v26  ;;  %v654_v49 = vadd.f32 %v653_v32, %v652_v42  ;;  %v2668_v13 = vadd.f32 %v719_v55, %v2397_v40  ;;  %v775_v36 = vmul.f32 %v2662_v21, %v2662_v21 }
 0x100   :  { %v661_v59 = vadd.f32 %v660_v0, %v600_v53  ;;  %v779_v39 = vmul.f32 %v2665_v37, %v2665_v37  ;;  %v668_v26 = vadd.f32 %v602_v31, %v601_v8  ;;  %v2685_v1 = vadd.f32 %v347_v47, %v2379_v30  ;;  %v3755_v47 = vld [vmem:[#allocation27_spill] sm:$0xff] }
 0x101   :  { %v648_v50 = vrot.slane %v647_v57, 1  ;;  %v655_v22 = vrot.slane %v654_v49, 2  ;;  %v2680_v2 = vpop.permute.xlu1 %570  ;;  %v783_v10 = vmul.f32 %v2668_v13, %v2668_v13 }
 0x102   :  { %v662_v42 = vrot.slane %v661_v59, 4  ;;  %3752 = vst [vmem:[#allocation39_spill] sm:$0xff] %v2680_v2  ;;  %v2682_v40 = vpop.permute.xlu0 %565  ;;  %v819_v0 = vadd.f32 %v779_v39, %v775_v36  ;;  %v604_v31 = vmul.f32 %v2680_v2, %v2685_v1 }
 0x103   :  { %3753 = vst [vmem:[#allocation40_spill] sm:$0xff] %v2682_v40  ;;  %v603_v27 = vmul.f32 %v2682_v40, %v2674_v16  ;;  %v649_v20 = vadd.f32 %v648_v50, %v647_v57  ;;  %v656_v18 = vadd.f32 %v655_v22, %v654_v49 }
 0x104   :  { %v663_v32 = vadd.f32 %v662_v42, %v661_v59  ;;  %v820_v53 = vadd.f32 %v819_v0, %v783_v10  ;;  %v3756_v10 = vld [vmem:[#allocation29_spill] sm:$0xff] }
 0x105   :  { %v669_v8 = vadd.f32 %v668_v26, %v603_v27  ;;  %v693_v55 = vmul.f32 %v649_v20, %v2358_v24  ;;  %v694_v30 = vmul.f32 %v649_v20, %v3754_v29  ;;  %v695_v7 = vmul.f32 %v649_v20, %v3755_v47 }
 0x106   :  { %v696_v40 = vmul.f32 %v649_v20, %v2484_v44  ;;  %v657_v17 = vrot.slane %v656_v18, 1  ;;  %v664_v51 = vrot.slane %v663_v32, 2  ;;  %v821_v36 = vadd.f32 %v820_v53, %v787_v28  ;;  %v3757_v20 = vld [vmem:[#allocation28_spill] sm:$0xff] }
 0x107   :  { %v670_v38 = vadd.f32 %v669_v8, %v604_v31  ;;  %v725_v57 = vmax.f32 %v693_v55, 0.0  ;;  %v726_v49 = vmax.f32 %v694_v30, 0.0  ;;  %v727_v59 = vmax.f32 %v695_v7, 0.0 }
 0x108   :  { %v728_v39 = vmax.f32 %v696_v40, 0.0  ;;  %v658_v50 = vadd.f32 %v657_v17, %v656_v18  ;;  %v665_v22 = vadd.f32 %v664_v51, %v663_v32 }
 0x109   :  { %v2698_v26 = vadd.f32 %v725_v57, %v2358_v24  ;;  %v2701_v42 = vadd.f32 %v726_v49, %v3754_v29  ;;  %v671_v27 = vrot.slane %v670_v38, 4  ;;  %v2710_v51 = vadd.f32 %v727_v59, %v3755_v47 }
 0x10a   :  { %v697_v0 = vmul.f32 %v658_v50, %v3756_v10  ;;  %v698_v2 = vmul.f32 %v658_v50, %v3757_v20  ;;  %v699_v31 = vmul.f32 %v658_v50, %v2478_v43  ;;  %v700_v28 = vmul.f32 %v658_v50, %v2614_v11 }
 0x10b   :  { %v789_v7 = vmul.f32 %v2698_v26, %v2698_v26  ;;  %v666_v17 = vrot.slane %v665_v22, 1  ;;  %v2713_v24 = vadd.f32 %v728_v39, %v2484_v44  ;;  %v790_v29 = vmul.f32 %v2701_v42, %v2701_v42 }
 0x10c   :  { %v672_v18 = vadd.f32 %v671_v27, %v670_v38  ;;  %v729_v8 = vmax.f32 %v697_v0, 0.0  ;;  %v730_v53 = vmax.f32 %v698_v2, 0.0  ;;  %v731_v55 = vmax.f32 %v699_v31, 0.0 }
 0x10d   :  { %v667_v40 = vadd.f32 %v666_v17, %v665_v22  ;;  %v808_v32 = vadd.f32 %v2623_v33, %v789_v7  ;;  %v732_v30 = vmax.f32 %v700_v28, 0.0  ;;  %v792_v59 = vmul.f32 %v2713_v24, %v2713_v24 }
 0x10e   :  { %v673_v39 = vrot.slane %v672_v18, 2  ;;  %v791_v38 = vmul.f32 %v2710_v51, %v2710_v51  ;;  %v815_v0 = vadd.f32 %v2634_v35, %v790_v29  ;;  %v2728_v31 = vadd.f32 %v729_v8, %v3756_v10 }
 0x10f   :  { %v701_v57 = vmul.f32 %v667_v40, %v2490_v48  ;;  %v702_v49 = vmul.f32 %v667_v40, %v2487_v46  ;;  %v703_v47 = vmul.f32 %v667_v40, %v2596_v5  ;;  %v704_v44 = vmul.f32 %v667_v40, %v2647_v54 }
 0x110   :  { %v674_v27 = vadd.f32 %v673_v39, %v672_v18  ;;  %v2731_v28 = vadd.f32 %v730_v53, %v3757_v20  ;;  %v2734_v7 = vadd.f32 %v732_v30, %v2614_v11  ;;  %v2737_v17 = vadd.f32 %v731_v55, %v2478_v43 }
 0x111   :  { %v733_v33 = vmax.f32 %v701_v57, 0.0  ;;  %v734_v50 = vmax.f32 %v702_v49, 0.0  ;;  %v735_v2 = vmax.f32 %v703_v47, 0.0  ;;  %v736_v22 = vmax.f32 %v704_v44, 0.0 }
 0x112   :  { %v675_v40 = vrot.slane %v674_v27, 1  ;;  %v822_v57 = vadd.f32 %v821_v36, %v791_v38  ;;  %v829_v49 = vadd.f32 %v2636_v58, %v792_v59  ;;  %v793_v43 = vmul.f32 %v2728_v31, %v2728_v31 }
 0x113   :  { %v2741_v18 = vadd.f32 %v733_v33, %v2490_v48  ;;  %v2744_v35 = vadd.f32 %v734_v50, %v2487_v46  ;;  %v2747_v10 = vadd.f32 %v736_v22, %v2647_v54  ;;  %v2750_v20 = vadd.f32 %v735_v2, %v2596_v5 }
 0x114   :  { %v676_v11 = vadd.f32 %v675_v40, %v674_v27  ;;  %v794_v36 = vmul.f32 %v2731_v28, %v2731_v28  ;;  %v796_v48 = vmul.f32 %v2734_v7, %v2734_v7  ;;  %v795_v46 = vmul.f32 %v2737_v17, %v2737_v17 }
 0x115   :  { %v797_v8 = vmul.f32 %v2741_v18, %v2741_v18  ;;  %v798_v53 = vmul.f32 %v2744_v35, %v2744_v35  ;;  %v799_v55 = vmul.f32 %v2750_v20, %v2750_v20  ;;  %v800_v30 = vmul.f32 %v2747_v10, %v2747_v10 }
 0x116   :  { %v705_v58 = vmul.f32 %v676_v11, %v2644_v6  ;;  %v706_v54 = vmul.f32 %v676_v11, %v2627_v34  ;;  %v707_v5 = vmul.f32 %v676_v11, %v2674_v16  ;;  %v708_v29 = vmul.f32 %v676_v11, %v2685_v1 }
 0x117   :  { %v809_v38 = vadd.f32 %v808_v32, %v793_v43  ;;  %v816_v33 = vadd.f32 %v815_v0, %v794_v36  ;;  %v823_v50 = vadd.f32 %v822_v57, %v795_v46  ;;  %v830_v2 = vadd.f32 %v829_v49, %v796_v48 }
 0x118   :  { %v737_v47 = vmax.f32 %v705_v58, 0.0  ;;  %v738_v44 = vmax.f32 %v706_v54, 0.0  ;;  %v739_v59 = vmax.f32 %v707_v5, 0.0  ;;  %v740_v39 = vmax.f32 %v708_v29, 0.0 }
 0x119   :  { %v810_v62 = vadd.f32 %v809_v38, %v797_v8  ;;  %v817_v25 = vadd.f32 %v816_v33, %v798_v53  ;;  %v824_v63 = vadd.f32 %v823_v50, %v799_v55  ;;  %v831_v9 = vadd.f32 %v830_v2, %v800_v30  ;;  %v3782_v38 = vld [vmem:[#allocation8_spill] sm:$0xff]  ;;  %v3783_v50 = vld [vmem:[#allocation7_spill] sm:$0xff] }
 0x11a   :  { %v769_v22 = vadd.f32 %v737_v47, %v2644_v6  ;;  %v770_v27 = vadd.f32 %v738_v44, %v2627_v34  ;;  %v771_v40 = vadd.f32 %v739_v59, %v2674_v16  ;;  %v772_v11 = vadd.f32 %v740_v39, %v2685_v1  ;;  %v3778_v47 = vld [vmem:[#allocation6_spill] sm:$0xff]  ;;  %v3779_v44 = vld [vmem:[#allocation5_spill] sm:$0xff] }
 0x11b   :  { %v3780_v59 = vld [vmem:[#allocation9_spill] sm:$0xff] }
 0x11c   :  { %v801_v58 = vmul.f32 %v769_v22, %v769_v22  ;;  %v802_v54 = vmul.f32 %v770_v27, %v770_v27  ;;  %v803_v5 = vmul.f32 %v771_v40, %v771_v40  ;;  %v804_v29 = vmul.f32 %v772_v11, %v772_v11  ;;  %v3781_v39 = vld [vmem:[#allocation13_spill] sm:$0xff] }
 0x11e   :  { %v811_v32 = vadd.f32 %v810_v62, %v801_v58  ;;  %v818_v0 = vadd.f32 %v817_v25, %v802_v54  ;;  %v825_v57 = vadd.f32 %v824_v63, %v803_v5  ;;  %v832_v49 = vadd.f32 %v831_v9, %v804_v29  ;;  %v3786_v58 = vld [vmem:[#allocation10_spill] sm:$0xff]  ;;  %v3787_v5 = vld [vmem:[#allocation12_spill] sm:$0xff] }
 0x120   :  { %v833_v43 = vmax.f32 %v811_v32, 1e-24  ;;  %v834_v6 = vmax.f32 %v818_v0, 1e-24  ;;  %v835_v36 = vmax.f32 %v825_v57, 1e-24 }
 0x121   :  { %v836_v34 = vmax.f32 %v832_v49, 1e-24  ;;  %v3788_v32 = vld [vmem:[#allocation14_spill] sm:$0xff]  ;;  %v3789_v57 = vld [vmem:[#allocation19_spill] sm:$0xff] }
 0x122   :  { %1890 = vrsqrt.f32 %v833_v43  ;;  %v3790_v43 = vld [vmem:[#allocation17_spill] sm:$0xff] }
 0x123   :  { %1892 = vrsqrt.f32 %v834_v6 }
 0x124   :  { %1894 = vrsqrt.f32 %v835_v36  ;;  %v3791_v36 = vld [vmem:[#allocation16_spill] sm:$0xff] }
 0x125   :  { %1896 = vrsqrt.f32 %v836_v34 }
 0x12f   :  { %v1891_v16 = vpop.eup %1890 }
 0x130   :  { %v1893_v1 = vpop.eup %1892  ;;  %v2777_v48 = vmul.f32 %v1891_v16, %v2536_v41  ;;  %v2780_v46 = vmul.f32 %v1891_v16, %v2545_v45  ;;  %v2783_v62 = vmul.f32 %v1891_v16, %v2554_v56  ;;  %v2786_v9 = vmul.f32 %v1891_v16, %v2563_v19 }
 0x131   :  { %v1895_v63 = vpop.eup %1894  ;;  %v2789_v25 = vmul.f32 %v1893_v1, %v2539_v12  ;;  %v2792_v8 = vmul.f32 %v1893_v1, %v2548_v61  ;;  %v2795_v53 = vmul.f32 %v1893_v1, %v2557_v14  ;;  %v2798_v41 = vmul.f32 %v1893_v1, %v2566_v23 }
 0x132   :  { %3758 = vst [vmem:[#allocation21_spill] sm:$0xff] %v2786_v9  ;;  %v1897_v45 = vpop.eup %1896  ;;  %v2801_v56 = vmul.f32 %v1895_v63, %v2662_v21  ;;  %v2804_v19 = vmul.f32 %v1895_v63, %v2665_v37  ;;  %v2807_v55 = vmul.f32 %v1895_v63, %v2668_v13  ;;  %v2810_v12 = vmul.f32 %v1895_v63, %v2571_v15 }
 0x133   :  { %3759 = vst [vmem:[#allocation27_spill] sm:$0xff] %v2798_v41  ;;  %v2813_v61 = vmul.f32 %v1897_v45, %v2542_v60  ;;  %v2816_v14 = vmul.f32 %v1897_v45, %v2551_v52  ;;  %v2819_v23 = vmul.f32 %v1897_v45, %v2560_v3  ;;  %v2822_v21 = vmul.f32 %v1897_v45, %v2574_v4 }
 0x134   :  { %3760 = vst [vmem:[#allocation29_spill] sm:$0xff] %v2810_v12  ;;  %v2825_v37 = vmul.f32 %v1891_v16, %v2698_v26  ;;  %v2828_v13 = vmul.f32 %v1893_v1, %v2701_v42  ;;  %v2831_v15 = vmul.f32 %v1895_v63, %v2710_v51  ;;  %v2834_v60 = vmul.f32 %v1897_v45, %v2713_v24 }
 0x135   :  { %3761 = vst [vmem:[#allocation28_spill] sm:$0xff] %v2819_v23  ;;  %3762 = vst [vmem:[#allocation41_spill] sm:$0xff] %v2822_v21  ;;  %v2837_v52 = vmul.f32 %v1891_v16, %v2728_v31  ;;  %v2840_v3 = vmul.f32 %v1893_v1, %v2731_v28  ;;  %v2843_v4 = vmul.f32 %v1895_v63, %v2737_v17 }
 0x136   :  { %3763 = vst [vmem:[#allocation42_spill] sm:$0xff] %v2825_v37  ;;  %3764 = vst [vmem:[#allocation43_spill] sm:$0xff] %v2828_v13  ;;  %v2846_v26 = vmul.f32 %v1897_v45, %v2734_v7  ;;  %v2849_v42 = vmul.f32 %v1891_v16, %v2741_v18  ;;  %v2852_v51 = vmul.f32 %v1893_v1, %v2744_v35 }
 0x137   :  { %3765 = vst [vmem:[#allocation44_spill] sm:$0xff] %v2831_v15  ;;  %3766 = vst [vmem:[#allocation45_spill] sm:$0xff] %v2834_v60  ;;  %v2855_v24 = vmul.f32 %v1895_v63, %v2750_v20  ;;  %v2858_v31 = vmul.f32 %v1897_v45, %v2747_v10  ;;  %v2860_v28 = vmul.f32 %v1891_v16, %v769_v22  ;;  %v3784_v22 = vld [vmem:[#allocation11_spill] sm:$0xff]  ;;  %v3792_v16 = vld [vmem:[#allocation18_spill] sm:$0xff] }
 0x138   :  { %3767 = vst [vmem:[#allocation46_spill] sm:$0xff] %v2837_v52  ;;  %3768 = vst [vmem:[#allocation47_spill] sm:$0xff] %v2840_v3  ;;  %v2862_v30 = vmul.f32 %v1893_v1, %v770_v27  ;;  %v2864_v17 = vmul.f32 %v1895_v63, %v771_v40  ;;  %v2866_v7 = vmul.f32 %v1897_v45, %v772_v11  ;;  %v3785_v40 = vld [vmem:[#allocation15_spill] sm:$0xff]  ;;  %v3793_v63 = vld [vmem:[#allocation24_spill] sm:$0xff] }
 0x139   :  { %3769 = vst [vmem:[#allocation48_spill] sm:$0xff] %v2843_v4  ;;  %3770 = vst [vmem:[#allocation49_spill] sm:$0xff] %v2846_v26  ;;  %v873_v18 = vmul.f32 %v2777_v48, %v3778_v47  ;;  %v874_v35 = vmul.f32 %v2789_v25, %v3779_v44  ;;  %v875_v20 = vmul.f32 %v2801_v56, %v3780_v59  ;;  %v3800_v59 = vld [vmem:[#allocation30_spill] sm:$0xff]  ;;  %v3801_v44 = vld [vmem:[#allocation35_spill] sm:$0xff] }
 0x13a   :  { %3771 = vst [vmem:[#allocation50_spill] sm:$0xff] %v2849_v42  ;;  %3772 = vst [vmem:[#allocation51_spill] sm:$0xff] %v2852_v51  ;;  %v876_v10 = vmul.f32 %v2813_v61, %v3781_v39  ;;  %v877_v33 = vmul.f32 %v2780_v46, %v3782_v38  ;;  %v878_v2 = vmul.f32 %v2792_v8, %v3783_v50  ;;  %v3798_v50 = vld [vmem:[#allocation26_spill] sm:$0xff]  ;;  %v3799_v38 = vld [vmem:[#allocation25_spill] sm:$0xff] }
 0x13b   :  { %3773 = vst [vmem:[#allocation52_spill] sm:$0xff] %v2855_v24  ;;  %3774 = vst [vmem:[#allocation53_spill] sm:$0xff] %v2858_v31  ;;  %v879_v27 = vmul.f32 %v2804_v19, %v3784_v22  ;;  %v880_v11 = vmul.f32 %v2816_v14, %v3785_v40  ;;  %v881_v54 = vmul.f32 %v2783_v62, %v3786_v58  ;;  %v3794_v40 = vld [vmem:[#allocation22_spill] sm:$0xff]  ;;  %v3796_v58 = vld [vmem:[#allocation23_spill] sm:$0xff] }
 0x13c   :  { %3775 = vst [vmem:[#allocation54_spill] sm:$0xff] %v2860_v28  ;;  %3776 = vst [vmem:[#allocation55_spill] sm:$0xff] %v2862_v30  ;;  %v882_v29 = vmul.f32 %v2795_v53, %v3787_v5  ;;  %v883_v0 = vmul.f32 %v2807_v55, %v3788_v32  ;;  %v884_v49 = vmul.f32 %v2819_v23, %v3789_v57  ;;  %v3795_v5 = vld [vmem:[#allocation20_spill] sm:$0xff]  ;;  %v3797_v22 = vld [vmem:[#allocation31_spill] sm:$0xff] }
 0x13d   :  { %3777 = vst [vmem:[#allocation56_spill] sm:$0xff] %v2864_v17  ;;  %v885_v6 = vmul.f32 %v2786_v9, %v3790_v43  ;;  %v886_v34 = vmul.f32 %v2798_v41, %v3791_v36  ;;  %v887_v1 = vmul.f32 %v2810_v12, %v3792_v16  ;;  %v888_v45 = vmul.f32 %v2822_v21, %v3793_v63  ;;  %v3802_v47 = vld [vmem:[#allocation33_spill] sm:$0xff] }
 0x13e   :  { %v889_v39 = vmul.f32 %v2825_v37, %v3794_v40  ;;  %v890_v32 = vmul.f32 %v2828_v13, %v3795_v5  ;;  %v891_v57 = vmul.f32 %v2831_v15, %v3796_v58  ;;  %v892_v43 = vmul.f32 %v2834_v60, %v3797_v22  ;;  %v3803_v13 = vld [vmem:[#allocation32_spill] sm:$0xff]  ;;  %v3804_v15 = vld [vmem:[#allocation34_spill] sm:$0xff] }
 0x13f   :  { %v893_v36 = vmul.f32 %v2837_v52, %v3798_v50  ;;  %v894_v16 = vmul.f32 %v2840_v3, %v3799_v38  ;;  %v895_v63 = vmul.f32 %v2843_v4, %v3800_v59  ;;  %v896_v40 = vmul.f32 %v2846_v26, %v3801_v44  ;;  %v3805_v60 = vld [vmem:[#allocation38_spill] sm:$0xff]  ;;  %v3806_v52 = vld [vmem:[#allocation37_spill] sm:$0xff]  ;;  %v3807_v3 = vld [vmem:[#allocation36_spill] sm:$0xff] }
 0x140   :  { %v897_v5 = vmul.f32 %v2849_v42, %v3802_v47  ;;  %v898_v58 = vmul.f32 %v2852_v51, %v3803_v13  ;;  %v899_v22 = vmul.f32 %v2855_v24, %v3804_v15  ;;  %v900_v50 = vmul.f32 %v2858_v31, %v3805_v60  ;;  %v3808_v4 = vld [vmem:[#allocation40_spill] sm:$0xff]  ;;  %v3809_v26 = vld [vmem:[#allocation39_spill] sm:$0xff] }
 0x141   :  { %v901_v38 = vmul.f32 %v2860_v28, %v3806_v52  ;;  %v902_v59 = vmul.f32 %v2862_v30, %v3807_v3  ;;  %v903_v44 = vmul.f32 %v2864_v17, %v3808_v4  ;;  %v904_v47 = vmul.f32 %v2866_v7, %v3809_v26 }
 0x142   :  { %v905_v42 = vadd.f32 %v874_v35, %v873_v18  ;;  %v914_v13 = vadd.f32 %v878_v2, %v877_v33  ;;  %v923_v51 = vadd.f32 %v882_v29, %v881_v54  ;;  %v932_v37 = vadd.f32 %v886_v34, %v885_v6 }
 0x143   :  { %v941_v15 = vadd.f32 %v890_v32, %v889_v39  ;;  %v950_v24 = vadd.f32 %v894_v16, %v893_v36  ;;  %v959_v21 = vadd.f32 %v898_v58, %v897_v5  ;;  %v968_v60 = vadd.f32 %v902_v59, %v901_v38 }
 0x144   :  { %v906_v31 = vadd.f32 %v905_v42, %v875_v20  ;;  %v915_v12 = vadd.f32 %v914_v13, %v879_v27  ;;  %v924_v52 = vadd.f32 %v923_v51, %v883_v0  ;;  %v933_v28 = vadd.f32 %v932_v37, %v887_v1 }
 0x145   :  { %v942_v41 = vadd.f32 %v941_v15, %v891_v57  ;;  %v951_v3 = vadd.f32 %v950_v24, %v895_v63  ;;  %v960_v30 = vadd.f32 %v959_v21, %v899_v22  ;;  %v969_v9 = vadd.f32 %v968_v60, %v903_v44 }
 0x146   :  { %v907_v4 = vadd.f32 %v906_v31, %v876_v10  ;;  %v916_v17 = vadd.f32 %v915_v12, %v880_v11  ;;  %v925_v23 = vadd.f32 %v924_v52, %v884_v49  ;;  %v934_v26 = vadd.f32 %v933_v28, %v888_v45 }
 0x147   :  { %v943_v18 = vadd.f32 %v942_v41, %v892_v43  ;;  %v952_v35 = vadd.f32 %v951_v3, %v896_v40  ;;  %v961_v33 = vadd.f32 %v960_v30, %v900_v50  ;;  %v970_v2 = vadd.f32 %v969_v9, %v904_v47 }
 0x148   :  { %v908_v39 = vrot.slane %v907_v4, 4  ;;  %v917_v54 = vrot.slane %v916_v17, 4  ;;  %v926_v58 = vrot.slane %v925_v23, 4  ;;  %v935_v59 = vrot.slane %v934_v26, 4 }
 0x149   :  { %v944_v42 = vrot.slane %v943_v18, 4  ;;  %v953_v13 = vrot.slane %v952_v35, 4  ;;  %v962_v51 = vrot.slane %v961_v33, 4  ;;  %v971_v37 = vrot.slane %v970_v2, 4 }
 0x14a   :  { %v909_v15 = vadd.f32 %v908_v39, %v907_v4  ;;  %v918_v24 = vadd.f32 %v917_v54, %v916_v17  ;;  %v927_v21 = vadd.f32 %v926_v58, %v925_v23  ;;  %v936_v60 = vadd.f32 %v935_v59, %v934_v26 }
 0x14b   :  { %v945_v31 = vadd.f32 %v944_v42, %v943_v18  ;;  %v954_v12 = vadd.f32 %v953_v13, %v952_v35  ;;  %v963_v52 = vadd.f32 %v962_v51, %v961_v33  ;;  %v972_v28 = vadd.f32 %v971_v37, %v970_v2  ;;  %v3810_v37 = vld [vmem:[#allocation28_spill] sm:$0xff] }
 0x14c   :  { %v910_v41 = vrot.slane %v909_v15, 2  ;;  %v919_v3 = vrot.slane %v918_v24, 2  ;;  %v928_v30 = vrot.slane %v927_v21, 2  ;;  %v937_v9 = vrot.slane %v936_v60, 2 }
 0x14d   :  { %v946_v47 = vrot.slane %v945_v31, 2  ;;  %v955_v44 = vrot.slane %v954_v12, 2  ;;  %v964_v20 = vrot.slane %v963_v52, 2  ;;  %v973_v10 = vrot.slane %v972_v28, 2 }
 0x14e   :  { %v911_v38 = vadd.f32 %v910_v41, %v909_v15  ;;  %v920_v50 = vadd.f32 %v919_v3, %v918_v24  ;;  %v929_v22 = vadd.f32 %v928_v30, %v927_v21  ;;  %v938_v27 = vadd.f32 %v937_v9, %v936_v60  ;;  %v3811_v24 = vld [vmem:[#allocation21_spill] sm:$0xff]  ;;  %v3812_v60 = vld [vmem:[#allocation27_spill] sm:$0xff]  ;;  %v3815_v3 = vld [vmem:[#allocation42_spill] sm:$0xff] }
 0x14f   :  { %v947_v4 = vadd.f32 %v946_v47, %v945_v31  ;;  %v956_v17 = vadd.f32 %v955_v44, %v954_v12  ;;  %v965_v23 = vadd.f32 %v964_v20, %v963_v52  ;;  %v974_v26 = vadd.f32 %v973_v10, %v972_v28  ;;  %v3813_v12 = vld [vmem:[#allocation29_spill] sm:$0xff]  ;;  %v3816_v9 = vld [vmem:[#allocation43_spill] sm:$0xff]  ;;  %v3817_v44 = vld [vmem:[#allocation44_spill] sm:$0xff] }
 0x150   :  { %v912_v40 = vrot.slane %v911_v38, 1  ;;  %v921_v11 = vrot.slane %v920_v50, 1  ;;  %v930_v5 = vrot.slane %v929_v22, 1  ;;  %v939_v29 = vrot.slane %v938_v27, 1  ;;  %v3814_v28 = vld [vmem:[#allocation41_spill] sm:$0xff] }
 0x151   :  { %v948_v32 = vrot.slane %v947_v4, 1  ;;  %v957_v0 = vrot.slane %v956_v17, 1  ;;  %v966_v57 = vrot.slane %v965_v23, 1  ;;  %v975_v49 = vrot.slane %v974_v26, 1  ;;  %v3818_v10 = vld [vmem:[#allocation45_spill] sm:$0xff] }
 0x152   :  { %v913_v43 = vadd.f32 %v912_v40, %v911_v38  ;;  %v922_v6 = vadd.f32 %v921_v11, %v920_v50  ;;  %v931_v36 = vadd.f32 %v930_v5, %v929_v22  ;;  %v940_v34 = vadd.f32 %v939_v29, %v938_v27  ;;  %v3819_v50 = vld [vmem:[#allocation46_spill] sm:$0xff]  ;;  %v3820_v27 = vld [vmem:[#allocation47_spill] sm:$0xff] }
 0x153   :  { %v949_v16 = vadd.f32 %v948_v32, %v947_v4  ;;  %v958_v1 = vadd.f32 %v957_v0, %v956_v17  ;;  %v967_v63 = vadd.f32 %v966_v57, %v965_v23  ;;  %v976_v45 = vadd.f32 %v975_v49, %v974_v26  ;;  %v3821_v17 = vld [vmem:[#allocation48_spill] sm:$0xff]  ;;  %v3822_v26 = vld [vmem:[#allocation49_spill] sm:$0xff]  ;;  %v3823_v11 = vld [vmem:[#allocation50_spill] sm:$0xff] }
 0x154   :  { %v2933_v18 = vmul.f32 %v913_v43, %v2777_v48  ;;  %v2936_v35 = vmul.f32 %v913_v43, %v2789_v25  ;;  %v2939_v33 = vmul.f32 %v913_v43, %v2801_v56  ;;  %v2942_v2 = vmul.f32 %v913_v43, %v2813_v61  ;;  %v3824_v29 = vld [vmem:[#allocation51_spill] sm:$0xff]  ;;  %v3825_v0 = vld [vmem:[#allocation52_spill] sm:$0xff]  ;;  %v3826_v49 = vld [vmem:[#allocation53_spill] sm:$0xff] }
 0x155   :  { %v2945_v39 = vmul.f32 %v922_v6, %v2780_v46  ;;  %v2948_v54 = vmul.f32 %v922_v6, %v2792_v8  ;;  %v2951_v58 = vmul.f32 %v922_v6, %v2804_v19  ;;  %v2954_v59 = vmul.f32 %v922_v6, %v2816_v14  ;;  %v3827_v6 = vld [vmem:[#allocation54_spill] sm:$0xff] }
 0x156   :  { %v2957_v42 = vmul.f32 %v931_v36, %v2783_v62  ;;  %v2960_v13 = vmul.f32 %v931_v36, %v2795_v53  ;;  %v2963_v51 = vmul.f32 %v931_v36, %v2807_v55  ;;  %v2966_v15 = vmul.f32 %v931_v36, %v3810_v37 }
 0x157   :  { %v2969_v21 = vmul.f32 %v940_v34, %v3811_v24  ;;  %v2972_v31 = vmul.f32 %v940_v34, %v3812_v60  ;;  %v2975_v52 = vmul.f32 %v940_v34, %v3813_v12  ;;  %v2978_v41 = vmul.f32 %v940_v34, %v3814_v28  ;;  %v3828_v34 = vld [vmem:[#allocation55_spill] sm:$0xff] }
 0x158   :  { %v2981_v30 = vmul.f32 %v949_v16, %v3815_v3  ;;  %v2984_v47 = vmul.f32 %v949_v16, %v3816_v9  ;;  %v2987_v20 = vmul.f32 %v949_v16, %v3817_v44  ;;  %v2990_v38 = vmul.f32 %v949_v16, %v3818_v10 }
 0x159   :  { %v2993_v22 = vmul.f32 %v958_v1, %v3819_v50  ;;  %v2996_v4 = vmul.f32 %v958_v1, %v3820_v27  ;;  %v2999_v23 = vmul.f32 %v958_v1, %v3821_v17  ;;  %v3002_v40 = vmul.f32 %v958_v1, %v3822_v26  ;;  %v3829_v1 = vld [vmem:[#allocation56_spill] sm:$0xff] }
 0x15a   :  { %v3005_v5 = vmul.f32 %v967_v63, %v3823_v11  ;;  %v3008_v32 = vmul.f32 %v967_v63, %v3824_v29  ;;  %v3011_v57 = vmul.f32 %v967_v63, %v3825_v0  ;;  %v3014_v43 = vmul.f32 %v967_v63, %v3826_v49 }
 0x15b   :  { %v3017_v36 = vmul.f32 %v976_v45, %v3827_v6  ;;  %v3020_v16 = vmul.f32 %v976_v45, %v3828_v34  ;;  %v3023_v26 = vmul.f32 %v976_v45, %v3829_v1  ;;  %v3026_v11 = vmul.f32 %v976_v45, %v2866_v7 }
 0x15c   :  { %v1009_v29 = vmax.f32 %v2933_v18, 0.0  ;;  %v1010_v0 = vmax.f32 %v2936_v35, 0.0  ;;  %v1011_v17 = vmax.f32 %v2939_v33, 0.0  ;;  %v1012_v63 = vmax.f32 %v2942_v2, 0.0 }
 0x15d   :  { %v1013_v6 = vmax.f32 %v2945_v39, 0.0  ;;  %v1014_v49 = vmax.f32 %v2948_v54, 0.0  ;;  %v1015_v34 = vmax.f32 %v2951_v58, 0.0  ;;  %v1016_v1 = vmax.f32 %v2954_v59, 0.0 }
 0x15e   :  { %v1017_v27 = vmax.f32 %v2957_v42, 0.0  ;;  %v1018_v45 = vmax.f32 %v2960_v13, 0.0  ;;  %v1019_v18 = vmax.f32 %v2963_v51, 0.0  ;;  %v1020_v35 = vmax.f32 %v2966_v15, 0.0 }
 0x15f   :  { %v1021_v33 = vmax.f32 %v2969_v21, 0.0  ;;  %v1022_v2 = vmax.f32 %v2972_v31, 0.0  ;;  %v1023_v39 = vmax.f32 %v2975_v52, 0.0  ;;  %v1024_v54 = vmax.f32 %v2978_v41, 0.0 }
 0x160   :  { %v1025_v58 = vmax.f32 %v2981_v30, 0.0  ;;  %v1026_v59 = vmax.f32 %v2984_v47, 0.0  ;;  %v1027_v42 = vmax.f32 %v2987_v20, 0.0  ;;  %v1028_v13 = vmax.f32 %v2990_v38, 0.0 }
 0x161   :  { %v1029_v51 = vmax.f32 %v2993_v22, 0.0  ;;  %v1030_v15 = vmax.f32 %v2996_v4, 0.0  ;;  %v1031_v21 = vmax.f32 %v2999_v23, 0.0  ;;  %v1032_v31 = vmax.f32 %v3002_v40, 0.0 }
 0x162   :  { %v1033_v52 = vmax.f32 %v3005_v5, 0.0  ;;  %v1034_v41 = vmax.f32 %v3008_v32, 0.0  ;;  %v1035_v30 = vmax.f32 %v3011_v57, 0.0  ;;  %v1036_v47 = vmax.f32 %v3014_v43, 0.0 }
 0x163   :  { %v1037_v20 = vmax.f32 %v3017_v36, 0.0  ;;  %v1038_v38 = vmax.f32 %v3020_v16, 0.0  ;;  %v1039_v22 = vmax.f32 %v3023_v26, 0.0  ;;  %v1040_v4 = vmax.f32 %v3026_v11, 0.0  ;;  %v3837_v36 = vld [vmem:[#allocation54_spill] sm:$0xff]  ;;  %v3838_v16 = vld [vmem:[#allocation55_spill] sm:$0xff] }
 0x164   :  { %v3061_v23 = vadd.f32 %v1009_v29, %v2777_v48  ;;  %v3064_v40 = vadd.f32 %v1010_v0, %v2789_v25  ;;  %v3067_v5 = vadd.f32 %v1011_v17, %v2801_v56  ;;  %v3070_v32 = vadd.f32 %v1012_v63, %v2813_v61  ;;  %v3839_v63 = vld [vmem:[#allocation56_spill] sm:$0xff] }
 0x165   :  { %v3073_v57 = vadd.f32 %v1013_v6, %v2780_v46  ;;  %v3076_v43 = vadd.f32 %v1014_v49, %v2792_v8  ;;  %v3079_v26 = vadd.f32 %v1015_v34, %v2804_v19  ;;  %v3082_v48 = vadd.f32 %v1016_v1, %v2816_v14 }
 0x166   :  { %v3085_v25 = vadd.f32 %v1017_v27, %v2783_v62  ;;  %v3088_v56 = vadd.f32 %v1018_v45, %v2795_v53  ;;  %v3091_v61 = vadd.f32 %v1019_v18, %v2807_v55  ;;  %v3094_v46 = vadd.f32 %v1020_v35, %v3810_v37 }
 0x167   :  { %v3097_v8 = vadd.f32 %v1021_v33, %v3811_v24  ;;  %v3100_v19 = vadd.f32 %v1022_v2, %v3812_v60  ;;  %v3103_v14 = vadd.f32 %v1023_v39, %v3813_v12  ;;  %v3106_v62 = vadd.f32 %v1024_v54, %v3814_v28  ;;  %v3830_v12 = vld [vmem:[#allocation47_spill] sm:$0xff]  ;;  %v3831_v28 = vld [vmem:[#allocation48_spill] sm:$0xff] }
 0x168   :  { %v3109_v53 = vadd.f32 %v1025_v58, %v3815_v3  ;;  %v3112_v55 = vadd.f32 %v1026_v59, %v3816_v9  ;;  %v3115_v37 = vadd.f32 %v1027_v42, %v3817_v44  ;;  %v3118_v24 = vadd.f32 %v1028_v13, %v3818_v10  ;;  %v3832_v3 = vld [vmem:[#allocation49_spill] sm:$0xff]  ;;  %v3833_v9 = vld [vmem:[#allocation50_spill] sm:$0xff]  ;;  %v3834_v44 = vld [vmem:[#allocation51_spill] sm:$0xff] }
 0x169   :  { %v3121_v60 = vadd.f32 %v1029_v51, %v3819_v50  ;;  %v3124_v27 = vadd.f32 %v1030_v15, %v3830_v12  ;;  %v3127_v17 = vadd.f32 %v1031_v21, %v3831_v28  ;;  %v3130_v11 = vadd.f32 %v1032_v31, %v3832_v3  ;;  %v3835_v10 = vld [vmem:[#allocation52_spill] sm:$0xff]  ;;  %v3836_v50 = vld [vmem:[#allocation53_spill] sm:$0xff] }
 0x16a   :  { %v3133_v29 = vadd.f32 %v1033_v52, %v3833_v9  ;;  %v3136_v0 = vadd.f32 %v1034_v41, %v3834_v44  ;;  %v3139_v49 = vadd.f32 %v1035_v30, %v3835_v10  ;;  %v3142_v6 = vadd.f32 %v1036_v47, %v3836_v50 }
 0x16b   :  { %v3145_v34 = vadd.f32 %v1037_v20, %v3837_v36  ;;  %v3148_v1 = vadd.f32 %v1038_v38, %v3838_v16  ;;  %v3151_v45 = vadd.f32 %v1039_v22, %v3839_v63  ;;  %v3154_v18 = vadd.f32 %v1040_v4, %v2866_v7 }
 0x16c   :  { %v1073_v35 = vmul.f32 %v3061_v23, %v3061_v23  ;;  %v1074_v33 = vmul.f32 %v3064_v40, %v3064_v40  ;;  %v1075_v2 = vmul.f32 %v3067_v5, %v3067_v5  ;;  %v1076_v39 = vmul.f32 %v3070_v32, %v3070_v32 }
 0x16d   :  { %v1077_v54 = vmul.f32 %v3073_v57, %v3073_v57  ;;  %v1078_v58 = vmul.f32 %v3076_v43, %v3076_v43  ;;  %v1079_v7 = vmul.f32 %v3079_v26, %v3079_v26  ;;  %v1080_v59 = vmul.f32 %v3082_v48, %v3082_v48 }
 0x16e   :  { %v1081_v42 = vmul.f32 %v3085_v25, %v3085_v25  ;;  %v1082_v13 = vmul.f32 %v3088_v56, %v3088_v56  ;;  %v1083_v51 = vmul.f32 %v3091_v61, %v3091_v61  ;;  %v1084_v15 = vmul.f32 %v3094_v46, %v3094_v46 }
 0x16f   :  { %v1105_v21 = vadd.f32 %v1077_v54, %v1073_v35  ;;  %v1112_v31 = vadd.f32 %v1078_v58, %v1074_v33  ;;  %v1119_v52 = vadd.f32 %v1079_v7, %v1075_v2  ;;  %v1126_v41 = vadd.f32 %v1080_v59, %v1076_v39 }
 0x170   :  { %v1085_v30 = vmul.f32 %v3097_v8, %v3097_v8  ;;  %v1086_v47 = vmul.f32 %v3100_v19, %v3100_v19  ;;  %v1087_v20 = vmul.f32 %v3103_v14, %v3103_v14  ;;  %v1088_v38 = vmul.f32 %v3106_v62, %v3106_v62 }
 0x171   :  { %v1106_v22 = vadd.f32 %v1105_v21, %v1081_v42  ;;  %v1113_v4 = vadd.f32 %v1112_v31, %v1082_v13  ;;  %v1120_v12 = vadd.f32 %v1119_v52, %v1083_v51  ;;  %v1127_v28 = vadd.f32 %v1126_v41, %v1084_v15  ;;  %v1445_v21 = vld [vmem:[%s3579_s5] sm:$0xff]  ;;  %v1451_v31 = vld [vmem:[%s3579_s5 + $0x30] sm:$0xff] }
 0x172   :  { %v1089_v3 = vmul.f32 %v3109_v53, %v3109_v53  ;;  %v1090_v9 = vmul.f32 %v3112_v55, %v3112_v55  ;;  %v1091_v44 = vmul.f32 %v3115_v37, %v3115_v37  ;;  %v1092_v10 = vmul.f32 %v3118_v24, %v3118_v24  ;;  %1852 = vmatprep.mubr.msk.f32.mxu0 %vm59_vm0, %v1445_v21 }
 0x173   :  { %v1107_v50 = vadd.f32 %v1106_v22, %v1085_v30  ;;  %v1114_v36 = vadd.f32 %v1113_v4, %v1086_v47  ;;  %v1121_v16 = vadd.f32 %v1120_v12, %v1087_v20  ;;  %v1128_v63 = vadd.f32 %v1127_v28, %v1088_v38  ;;  %1861 = vmatprep.mubr.msk.f32.mxu1 %vm59_vm0, %v1451_v31 }
 0x174   :  { %v1093_v35 = vmul.f32 %v3121_v60, %v3121_v60  ;;  %v1094_v33 = vmul.f32 %v3124_v27, %v3124_v27  ;;  %v1095_v2 = vmul.f32 %v3127_v17, %v3127_v17  ;;  %v1096_v39 = vmul.f32 %v3130_v11, %v3130_v11 }
 0x175   :  { %v1108_v54 = vadd.f32 %v1107_v50, %v1089_v3  ;;  %v1115_v58 = vadd.f32 %v1114_v36, %v1090_v9  ;;  %v1122_v7 = vadd.f32 %v1121_v16, %v1091_v44  ;;  %v1129_v59 = vadd.f32 %v1128_v63, %v1092_v10 }
 0x176   :  { %v1097_v42 = vmul.f32 %v3133_v29, %v3133_v29  ;;  %v1098_v13 = vmul.f32 %v3136_v0, %v3136_v0  ;;  %v1099_v51 = vmul.f32 %v3139_v49, %v3139_v49  ;;  %v1100_v15 = vmul.f32 %v3142_v6, %v3142_v6 }
 0x177   :  { %v1109_v52 = vadd.f32 %v1108_v54, %v1093_v35  ;;  %v1116_v41 = vadd.f32 %v1115_v58, %v1094_v33  ;;  %v1123_v30 = vadd.f32 %v1122_v7, %v1095_v2  ;;  %v1130_v47 = vadd.f32 %v1129_v59, %v1096_v39 }
 0x178   :  { %v1101_v20 = vmul.f32 %v3145_v34, %v3145_v34  ;;  %v1102_v38 = vmul.f32 %v3148_v1, %v3148_v1  ;;  %v1103_v22 = vmul.f32 %v3151_v45, %v3151_v45  ;;  %v1104_v4 = vmul.f32 %v3154_v18, %v3154_v18 }
 0x179   :  { %v1110_v12 = vadd.f32 %v1109_v52, %v1097_v42  ;;  %v1117_v28 = vadd.f32 %v1116_v41, %v1098_v13  ;;  %v1124_v3 = vadd.f32 %v1123_v30, %v1099_v51  ;;  %v1131_v9 = vadd.f32 %v1130_v47, %v1100_v15 }
 0x17b   :  { %v1111_v44 = vadd.f32 %v1110_v12, %v1101_v20  ;;  %v1118_v10 = vadd.f32 %v1117_v28, %v1102_v38  ;;  %v1125_v50 = vadd.f32 %v1124_v3, %v1103_v22  ;;  %v1132_v36 = vadd.f32 %v1131_v9, %v1104_v4  ;;  %v3859_v22 = vld [vmem:[#allocation12_spill] sm:$0xff]  ;;  %v3860_v12 = vld [vmem:[#allocation14_spill] sm:$0xff]  ;;  %v3861_v3 = vld [vmem:[#allocation17_spill] sm:$0xff] }
 0x17d   :  { %v1133_v16 = vmax.f32 %v1111_v44, 1e-24  ;;  %v1134_v63 = vmax.f32 %v1118_v10, 1e-24  ;;  %v1135_v35 = vmax.f32 %v1125_v50, 1e-24 }
 0x17e   :  { %v1136_v33 = vmax.f32 %v1132_v36, 1e-24  ;;  %v3862_v44 = vld [vmem:[#allocation16_spill] sm:$0xff]  ;;  %v3863_v50 = vld [vmem:[#allocation18_spill] sm:$0xff] }
 0x17f   :  { %1898 = vrsqrt.f32 %v1133_v16  ;;  %v3864_v16 = vld [vmem:[#allocation22_spill] sm:$0xff] }
 0x180   :  { %1900 = vrsqrt.f32 %v1134_v63 }
 0x181   :  { %1902 = vrsqrt.f32 %v1135_v35  ;;  %v3865_v35 = vld [vmem:[#allocation20_spill] sm:$0xff] }
 0x182   :  { %1904 = vrsqrt.f32 %v1136_v33 }
 0x18c   :  { %v1899_v2 = vpop.eup %1898 }
 0x18d   :  { %v1901_v39 = vpop.eup %1900  ;;  %v3229_v54 = vmul.f32 %v1899_v2, %v3061_v23  ;;  %v3232_v58 = vmul.f32 %v1899_v2, %v3073_v57  ;;  %v3235_v7 = vmul.f32 %v1899_v2, %v3085_v25  ;;  %v3238_v59 = vmul.f32 %v1899_v2, %v3097_v8 }
 0x18e   :  { %v1903_v42 = vpop.eup %1902  ;;  %v3241_v13 = vmul.f32 %v1901_v39, %v3064_v40  ;;  %v3244_v51 = vmul.f32 %v1901_v39, %v3076_v43  ;;  %v3247_v15 = vmul.f32 %v1901_v39, %v3088_v56  ;;  %v3250_v23 = vmul.f32 %v1901_v39, %v3100_v19 }
 0x18f   :  { %3840 = vst [vmem:[#allocation28_spill] sm:$0xff] %v3229_v54  ;;  %3841 = vst [vmem:[#allocation21_spill] sm:$0xff] %v3232_v58  ;;  %v3253_v57 = vmul.f32 %v1903_v42, %v3067_v5  ;;  %v3256_v25 = vmul.f32 %v1903_v42, %v3079_v26  ;;  %v3259_v8 = vmul.f32 %v1903_v42, %v3091_v61  ;;  %v1905_v43 = vpop.eup %1904 }
 0x190   :  { %3842 = vst [vmem:[#allocation27_spill] sm:$0xff] %v3235_v7  ;;  %3843 = vst [vmem:[#allocation29_spill] sm:$0xff] %v3238_v59  ;;  %v3262_v40 = vmul.f32 %v1903_v42, %v3103_v14  ;;  %v3265_v21 = vmul.f32 %v1899_v2, %v3109_v53  ;;  %v3268_v56 = vmul.f32 %v1901_v39, %v3112_v55 }
 0x191   :  { %v3271_v19 = vmul.f32 %v1903_v42, %v3115_v37  ;;  %v3274_v5 = vmul.f32 %v1899_v2, %v3121_v60  ;;  %v3277_v26 = vmul.f32 %v1901_v39, %v3124_v27  ;;  %v3280_v61 = vmul.f32 %v1903_v42, %v3127_v17 }
 0x192   :  { %3844 = vst [vmem:[#allocation41_spill] sm:$0xff] %v3265_v21  ;;  %3845 = vst [vmem:[#allocation42_spill] sm:$0xff] %v3268_v56  ;;  %v3283_v14 = vmul.f32 %v1899_v2, %v3133_v29  ;;  %v3286_v53 = vmul.f32 %v1901_v39, %v3136_v0  ;;  %v3289_v55 = vmul.f32 %v1903_v42, %v3139_v49  ;;  %v3852_v29 = vld [vmem:[#allocation6_spill] sm:$0xff]  ;;  %v3853_v0 = vld [vmem:[#allocation5_spill] sm:$0xff] }
 0x193   :  { %3846 = vst [vmem:[#allocation43_spill] sm:$0xff] %v3274_v5  ;;  %3847 = vst [vmem:[#allocation44_spill] sm:$0xff] %v3277_v26  ;;  %v3292_v37 = vmul.f32 %v1899_v2, %v3145_v34  ;;  %v3295_v60 = vmul.f32 %v1901_v39, %v3148_v1  ;;  %v3298_v27 = vmul.f32 %v1903_v42, %v3151_v45  ;;  %v3854_v49 = vld [vmem:[#allocation9_spill] sm:$0xff]  ;;  %v3855_v34 = vld [vmem:[#allocation8_spill] sm:$0xff] }
 0x194   :  { %3848 = vst [vmem:[#allocation45_spill] sm:$0xff] %v3283_v14  ;;  %3849 = vst [vmem:[#allocation46_spill] sm:$0xff] %v3286_v53  ;;  %v3301_v17 = vmul.f32 %v1905_v43, %v3154_v18  ;;  %v1173_v31 = vmul.f32 %v3229_v54, %v3852_v29  ;;  %v1174_v52 = vmul.f32 %v3241_v13, %v3853_v0  ;;  %v3856_v1 = vld [vmem:[#allocation7_spill] sm:$0xff]  ;;  %v3858_v18 = vld [vmem:[#allocation10_spill] sm:$0xff] }
 0x195   :  { %3850 = vst [vmem:[#allocation47_spill] sm:$0xff] %v3292_v37  ;;  %3851 = vst [vmem:[#allocation48_spill] sm:$0xff] %v3295_v60  ;;  %v1175_v41 = vmul.f32 %v3253_v57, %v3854_v49  ;;  %v1177_v30 = vmul.f32 %v3232_v58, %v3855_v34  ;;  %v1178_v47 = vmul.f32 %v3244_v51, %v3856_v1  ;;  %v3857_v45 = vld [vmem:[#allocation11_spill] sm:$0xff]  ;;  %v3867_v42 = vld [vmem:[#allocation26_spill] sm:$0xff] }
 0x196   :  { %v1179_v20 = vmul.f32 %v3256_v25, %v3857_v45  ;;  %v1181_v38 = vmul.f32 %v3235_v7, %v3858_v18  ;;  %v1182_v4 = vmul.f32 %v3247_v15, %v3859_v22  ;;  %v1183_v28 = vmul.f32 %v3259_v8, %v3860_v12  ;;  %v3866_v2 = vld [vmem:[#allocation23_spill] sm:$0xff]  ;;  %v3868_v0 = vld [vmem:[#allocation25_spill] sm:$0xff]  ;;  %v3869_v34 = vld [vmem:[#allocation30_spill] sm:$0xff] }
 0x197   :  { %v1185_v9 = vmul.f32 %v3238_v59, %v3861_v3  ;;  %v1186_v10 = vmul.f32 %v3250_v23, %v3862_v44  ;;  %v1187_v36 = vmul.f32 %v3262_v40, %v3863_v50  ;;  %v1189_v63 = vmul.f32 %v3265_v21, %v3864_v16  ;;  %v3870_v45 = vld [vmem:[#allocation33_spill] sm:$0xff]  ;;  %v3871_v22 = vld [vmem:[#allocation32_spill] sm:$0xff]  ;;  %v3872_v3 = vld [vmem:[#allocation34_spill] sm:$0xff] }
 0x198   :  { %v1190_v33 = vmul.f32 %v3268_v56, %v3865_v35  ;;  %v1191_v39 = vmul.f32 %v3271_v19, %v3866_v2  ;;  %v1193_v29 = vmul.f32 %v3274_v5, %v3867_v42  ;;  %v1194_v49 = vmul.f32 %v3277_v26, %v3868_v0  ;;  %v3873_v50 = vld [vmem:[#allocation37_spill] sm:$0xff]  ;;  %v3874_v35 = vld [vmem:[#allocation36_spill] sm:$0xff]  ;;  %v3876_v5 = vld [vmem:[#allocation39_spill] sm:$0xff] }
 0x199   :  { %v1195_v1 = vmul.f32 %v3280_v61, %v3869_v34  ;;  %v1197_v18 = vmul.f32 %v3283_v14, %v3870_v45  ;;  %v1198_v12 = vmul.f32 %v3286_v53, %v3871_v22  ;;  %v1199_v44 = vmul.f32 %v3289_v55, %v3872_v3  ;;  %v3875_v42 = vld [vmem:[#allocation40_spill] sm:$0xff] }
 0x19a   :  { %v1201_v16 = vmul.f32 %v3292_v37, %v3873_v50  ;;  %v1202_v2 = vmul.f32 %v3295_v60, %v3874_v35  ;;  %v1203_v0 = vmul.f32 %v3298_v27, %v3875_v42  ;;  %v1204_v34 = vmul.f32 %v3301_v17, %v3876_v5 }
 0x19b   :  { %v1205_v21 = vadd.f32 %v1174_v52, %v1173_v31  ;;  %v1214_v45 = vadd.f32 %v1178_v47, %v1177_v30  ;;  %v1223_v14 = vadd.f32 %v1182_v4, %v1181_v38  ;;  %v1232_v59 = vadd.f32 %v1186_v10, %v1185_v9  ;;  %v3881_v30 = vld [vmem:[#allocation31_spill] sm:$0xff] }
 0x19c   :  { %v1241_v22 = vadd.f32 %v1190_v33, %v1189_v63  ;;  %v1250_v7 = vadd.f32 %v1194_v49, %v1193_v29  ;;  %v1259_v54 = vadd.f32 %v1198_v12, %v1197_v18  ;;  %v1268_v53 = vadd.f32 %v1202_v2, %v1201_v16  ;;  %v3882_v47 = vld [vmem:[#allocation35_spill] sm:$0xff] }
 0x19d   :  { %v1206_v58 = vadd.f32 %v1205_v21, %v1175_v41  ;;  %v1215_v3 = vadd.f32 %v1214_v45, %v1179_v20  ;;  %v1224_v50 = vadd.f32 %v1223_v14, %v1183_v28  ;;  %v1233_v37 = vadd.f32 %v1232_v59, %v1187_v36  ;;  %v3878_v14 = vld [vmem:[#allocation15_spill] sm:$0xff]  ;;  %v3880_v41 = vld [vmem:[#allocation24_spill] sm:$0xff] }
 0x19e   :  { %v1242_v26 = vadd.f32 %v1241_v22, %v1191_v39  ;;  %v1251_v35 = vadd.f32 %v1250_v7, %v1195_v1  ;;  %v1260_v60 = vadd.f32 %v1259_v54, %v1199_v44  ;;  %v1269_v56 = vadd.f32 %v1268_v53, %v1203_v0  ;;  %v3879_v53 = vld [vmem:[#allocation19_spill] sm:$0xff] }
 0x19f   :  { %v3354_v42 = vmul.f32 %v1905_v43, %v3070_v32  ;;  %v3357_v5 = vmul.f32 %v1905_v43, %v3082_v48  ;;  %v3360_v31 = vmul.f32 %v1905_v43, %v3094_v46  ;;  %v3363_v21 = vmul.f32 %v1905_v43, %v3106_v62  ;;  %v3877_v32 = vld [vmem:[#allocation13_spill] sm:$0xff] }
 0x1a0   :  { %v3366_v52 = vmul.f32 %v1905_v43, %v3118_v24  ;;  %v3369_v59 = vmul.f32 %v1905_v43, %v3130_v11  ;;  %v1270_v54 = vadd.f32 %v1269_v56, %v1204_v34  ;;  %v3372_v7 = vmul.f32 %v1905_v43, %v3142_v6  ;;  %v3883_v43 = vld [vmem:[#allocation38_spill] sm:$0xff] }
 0x1a1   :  { %v1176_v48 = vmul.f32 %v3354_v42, %v3877_v32  ;;  %v1180_v46 = vmul.f32 %v3357_v5, %v3878_v14  ;;  %v1184_v62 = vmul.f32 %v3360_v31, %v3879_v53  ;;  %v1188_v24 = vmul.f32 %v3363_v21, %v3880_v41 }
 0x1a2   :  { %v1192_v11 = vmul.f32 %v3366_v52, %v3881_v30  ;;  %v1196_v56 = vmul.f32 %v3369_v59, %v3882_v47  ;;  %v1271_v6 = vrot.slane %v1270_v54, 4  ;;  %v1200_v20 = vmul.f32 %v3372_v7, %v3883_v43 }
 0x1a3   :  { %v1207_v38 = vadd.f32 %v1206_v58, %v1176_v48  ;;  %v1216_v4 = vadd.f32 %v1215_v3, %v1180_v46  ;;  %v1225_v28 = vadd.f32 %v1224_v50, %v1184_v62  ;;  %v1234_v9 = vadd.f32 %v1233_v37, %v1188_v24 }
 0x1a4   :  { %v1243_v10 = vadd.f32 %v1242_v26, %v1192_v11  ;;  %v1252_v36 = vadd.f32 %v1251_v35, %v1196_v56  ;;  %v1272_v63 = vadd.f32 %v1271_v6, %v1270_v54  ;;  %v1261_v29 = vadd.f32 %v1260_v60, %v1200_v20 }
 0x1a5   :  { %v1208_v33 = vrot.slane %v1207_v38, 4  ;;  %v1217_v39 = vrot.slane %v1216_v4, 4  ;;  %v1226_v49 = vrot.slane %v1225_v28, 4  ;;  %v1235_v1 = vrot.slane %v1234_v9, 4 }
 0x1a6   :  { %v1244_v18 = vrot.slane %v1243_v10, 4  ;;  %v1253_v12 = vrot.slane %v1252_v36, 4  ;;  %v1273_v44 = vrot.slane %v1272_v63, 2  ;;  %v1262_v0 = vrot.slane %v1261_v29, 4 }
 0x1a7   :  { %v1209_v16 = vadd.f32 %v1208_v33, %v1207_v38  ;;  %v1218_v2 = vadd.f32 %v1217_v39, %v1216_v4  ;;  %v1227_v34 = vadd.f32 %v1226_v49, %v1225_v28  ;;  %v1236_v45 = vadd.f32 %v1235_v1, %v1234_v9 }
 0x1a8   :  { %v1245_v58 = vadd.f32 %v1244_v18, %v1243_v10  ;;  %v1254_v22 = vadd.f32 %v1253_v12, %v1252_v36  ;;  %v1274_v3 = vadd.f32 %v1273_v44, %v1272_v63  ;;  %v1263_v50 = vadd.f32 %v1262_v0, %v1261_v29 }
 0x1a9   :  { %v1210_v37 = vrot.slane %v1209_v16, 2  ;;  %v1219_v26 = vrot.slane %v1218_v2, 2  ;;  %v1228_v35 = vrot.slane %v1227_v34, 2  ;;  %v1237_v54 = vrot.slane %v1236_v45, 2 }
 0x1aa   :  { %v1246_v32 = vrot.slane %v1245_v58, 2  ;;  %v1255_v60 = vrot.slane %v1254_v22, 2  ;;  %v1275_v48 = vrot.slane %v1274_v3, 1  ;;  %v1264_v53 = vrot.slane %v1263_v50, 2 }
 0x1ab   :  { %v1211_v14 = vadd.f32 %v1210_v37, %v1209_v16  ;;  %v1220_v46 = vadd.f32 %v1219_v26, %v1218_v2  ;;  %v1229_v62 = vadd.f32 %v1228_v35, %v1227_v34  ;;  %v1238_v41 = vadd.f32 %v1237_v54, %v1236_v45 }
 0x1ac   :  { %v1247_v24 = vadd.f32 %v1246_v32, %v1245_v58  ;;  %v1256_v30 = vadd.f32 %v1255_v60, %v1254_v22  ;;  %v3388_v11 = vadd.f32 %v1275_v48, %v1274_v3  ;;  %v1265_v6 = vadd.f32 %v1264_v53, %v1263_v50 }
 0x1ad   :  { %v1212_v47 = vrot.slane %v1211_v14, 1  ;;  %v1221_v56 = vrot.slane %v1220_v46, 1  ;;  %v1230_v43 = vrot.slane %v1229_v62, 1  ;;  %v1239_v20 = vrot.slane %v1238_v41, 1 }
 0x1ae   :  { %v1248_v38 = vrot.slane %v1247_v24, 1  ;;  %v1257_v4 = vrot.slane %v1256_v30, 1  ;;  %v1266_v10 = vrot.slane %v1265_v6, 1  ;;  %v1308_v36 = vmul.f32 %v3388_v11, %v3301_v17 }
 0x1af   :  { %v3390_v28 = vadd.f32 %v1212_v47, %v1211_v14  ;;  %v3392_v9 = vadd.f32 %v1221_v56, %v1220_v46  ;;  %v3396_v63 = vadd.f32 %v1230_v43, %v1229_v62  ;;  %v3398_v33 = vadd.f32 %v1239_v20, %v1238_v41 }
 0x1b0   :  { %v3400_v39 = vadd.f32 %v1248_v38, %v1247_v24  ;;  %v3402_v29 = vadd.f32 %v1257_v4, %v1256_v30  ;;  %v3404_v49 = vadd.f32 %v1266_v10, %v1265_v6  ;;  %v1340_v12 = vmax.f32 %v1308_v36, 0.0 }
 0x1b1   :  { %v1280_v1 = vmul.f32 %v3390_v28, %v3354_v42  ;;  %v1284_v18 = vmul.f32 %v3392_v9, %v3357_v5  ;;  %v1288_v44 = vmul.f32 %v3396_v63, %v3360_v31  ;;  %v1292_v16 = vmul.f32 %v3398_v33, %v3363_v21 }
 0x1b2   :  { %v1296_v2 = vmul.f32 %v3400_v39, %v3366_v52  ;;  %v1300_v0 = vmul.f32 %v3402_v29, %v3369_v59  ;;  %v1304_v34 = vmul.f32 %v3404_v49, %v3372_v7  ;;  %v3421_v22 = vadd.f32 %v1340_v12, %v3301_v17 }
 0x1b3   :  { %v1312_v45 = vmax.f32 %v1280_v1, 0.0  ;;  %v1316_v58 = vmax.f32 %v1284_v18, 0.0  ;;  %v1320_v3 = vmax.f32 %v1288_v44, 0.0  ;;  %v1324_v37 = vmax.f32 %v1292_v16, 0.0 }
 0x1b4   :  { %v1328_v26 = vmax.f32 %v1296_v2, 0.0  ;;  %v1332_v50 = vmax.f32 %v1300_v0, 0.0  ;;  %v1336_v35 = vmax.f32 %v1304_v34, 0.0  ;;  %v1279_v41 = vmul.f32 %v3390_v28, %v3253_v57 }
 0x1b5   :  { %v1344_v54 = vadd.f32 %v1312_v45, %v3354_v42  ;;  %v1348_v32 = vadd.f32 %v1316_v58, %v3357_v5  ;;  %v1352_v60 = vadd.f32 %v1320_v3, %v3360_v31  ;;  %v1356_v48 = vadd.f32 %v1324_v37, %v3363_v21 }
 0x1b6   :  { %v1360_v14 = vadd.f32 %v1328_v26, %v3366_v52  ;;  %v1364_v46 = vadd.f32 %v1332_v50, %v3369_v59  ;;  %v1368_v17 = vadd.f32 %v1336_v35, %v3372_v7  ;;  %v1404_v5 = vmul.f32 %v3421_v22, %v3421_v22 }
 0x1b7   :  { %v1376_v53 = vmul.f32 %v1344_v54, %v1344_v54  ;;  %v1380_v62 = vmul.f32 %v1348_v32, %v1348_v32  ;;  %v1384_v24 = vmul.f32 %v1352_v60, %v1352_v60  ;;  %v1388_v30 = vmul.f32 %v1356_v48, %v1356_v48 }
 0x1b8   :  { %v1392_v42 = vmul.f32 %v1360_v14, %v1360_v14  ;;  %v1396_v31 = vmul.f32 %v1364_v46, %v1364_v46  ;;  %v1283_v21 = vmul.f32 %v3392_v9, %v3256_v25  ;;  %v1287_v52 = vmul.f32 %v3396_v63, %v3259_v8 }
 0x1b9   :  { %v1426_v47 = vadd.f32 %v1380_v62, %v1376_v53  ;;  %v1291_v59 = vmul.f32 %v3398_v33, %v3262_v40  ;;  %v1295_v7 = vmul.f32 %v3400_v39, %v3271_v19  ;;  %v1299_v56 = vmul.f32 %v3402_v29, %v3280_v61 }
 0x1ba   :  { %v1303_v6 = vmul.f32 %v3404_v49, %v3289_v55  ;;  %v1307_v20 = vmul.f32 %v3388_v11, %v3298_v27  ;;  %v1311_v38 = vmax.f32 %v1279_v41, 0.0  ;;  %v1315_v4 = vmax.f32 %v1283_v21, 0.0  ;;  %v3885_v41 = vld [vmem:[#allocation44_spill] sm:$0xff] }
 0x1bb   :  { %v1427_v43 = vadd.f32 %v1426_v47, %v1384_v24  ;;  %v1319_v10 = vmax.f32 %v1287_v52, 0.0  ;;  %v1323_v36 = vmax.f32 %v1291_v59, 0.0  ;;  %v1327_v1 = vmax.f32 %v1295_v7, 0.0 }
 0x1bc   :  { %v1331_v18 = vmax.f32 %v1299_v56, 0.0  ;;  %v1335_v44 = vmax.f32 %v1303_v6, 0.0  ;;  %v1339_v16 = vmax.f32 %v1307_v20, 0.0  ;;  %v1343_v2 = vadd.f32 %v1311_v38, %v3253_v57 }
 0x1bd   :  { %v1428_v12 = vadd.f32 %v1427_v43, %v1388_v30  ;;  %v1347_v0 = vadd.f32 %v1315_v4, %v3256_v25  ;;  %v1351_v34 = vadd.f32 %v1319_v10, %v3259_v8  ;;  %v1355_v45 = vadd.f32 %v1323_v36, %v3262_v40  ;;  %v3886_v30 = vld [vmem:[#allocation46_spill] sm:$0xff] }
 0x1be   :  { %v1359_v58 = vadd.f32 %v1327_v1, %v3271_v19  ;;  %v1363_v37 = vadd.f32 %v1331_v18, %v3280_v61  ;;  %v1367_v26 = vadd.f32 %v1335_v44, %v3289_v55  ;;  %v3456_v50 = vadd.f32 %v1339_v16, %v3298_v27 }
 0x1bf   :  { %v1429_v3 = vadd.f32 %v1428_v12, %v1392_v42  ;;  %v1400_v35 = vmul.f32 %v1368_v17, %v1368_v17  ;;  %v1375_v54 = vmul.f32 %v1343_v2, %v1343_v2  ;;  %v1379_v32 = vmul.f32 %v1347_v0, %v1347_v0  ;;  %v3884_v17 = vld [vmem:[#allocation42_spill] sm:$0xff] }
 0x1c0   :  { %v1383_v57 = vmul.f32 %v1351_v34, %v1351_v34  ;;  %v1387_v25 = vmul.f32 %v1355_v45, %v1355_v45  ;;  %v1391_v48 = vmul.f32 %v1359_v58, %v1359_v58  ;;  %v1395_v8 = vmul.f32 %v1363_v37, %v1363_v37 }
 0x1c1   :  { %v1430_v60 = vadd.f32 %v1429_v3, %v1396_v31  ;;  %v1399_v14 = vmul.f32 %v1367_v26, %v1367_v26  ;;  %v1419_v40 = vadd.f32 %v1379_v32, %v1375_v54  ;;  %v1278_v19 = vmul.f32 %v3390_v28, %v3241_v13  ;;  %v3887_v31 = vld [vmem:[#allocation48_spill] sm:$0xff] }
 0x1c2   :  { %v1282_v61 = vmul.f32 %v3392_v9, %v3244_v51  ;;  %v1286_v27 = vmul.f32 %v3396_v63, %v3247_v15  ;;  %v1290_v46 = vmul.f32 %v3398_v33, %v3250_v23  ;;  %v1294_v53 = vmul.f32 %v3400_v39, %v3884_v17  ;;  %v3888_v54 = vld [vmem:[#allocation28_spill] sm:$0xff] }
 0x1c3   :  { %v1431_v55 = vadd.f32 %v1430_v60, %v1400_v35  ;;  %v1420_v62 = vadd.f32 %v1419_v40, %v1383_v57  ;;  %v1298_v24 = vmul.f32 %v3402_v29, %v3885_v41  ;;  %v1302_v42 = vmul.f32 %v3404_v49, %v3886_v30  ;;  %v3889_v57 = vld [vmem:[#allocation21_spill] sm:$0xff] }
 0x1c4   :  { %v1306_v47 = vmul.f32 %v3388_v11, %v3887_v31  ;;  %v1310_v52 = vmax.f32 %v1278_v19, 0.0  ;;  %v1314_v59 = vmax.f32 %v1282_v61, 0.0  ;;  %v1318_v7 = vmax.f32 %v1286_v27, 0.0  ;;  %v3893_v27 = vld [vmem:[#allocation43_spill] sm:$0xff] }
 0x1c5   :  { %v1432_v21 = vadd.f32 %v1431_v55, %v1404_v5  ;;  %v1421_v56 = vadd.f32 %v1420_v62, %v1387_v25  ;;  %v1322_v6 = vmax.f32 %v1290_v46, 0.0  ;;  %v1326_v43 = vmax.f32 %v1294_v53, 0.0  ;;  %v3890_v25 = vld [vmem:[#allocation27_spill] sm:$0xff]  ;;  %v3892_v55 = vld [vmem:[#allocation41_spill] sm:$0xff] }
 0x1c6   :  { %v1330_v20 = vmax.f32 %v1298_v24, 0.0  ;;  %v1334_v4 = vmax.f32 %v1302_v42, 0.0  ;;  %v1338_v10 = vmax.f32 %v1306_v47, 0.0  ;;  %v1342_v36 = vadd.f32 %v1310_v52, %v3241_v13  ;;  %v3895_v53 = vld [vmem:[#allocation47_spill] sm:$0xff] }
 0x1c7   :  { %v1436_v38 = vmax.f32 %v1432_v21, 1e-24  ;;  %v1422_v1 = vadd.f32 %v1421_v56, %v1391_v48  ;;  %v1346_v18 = vadd.f32 %v1314_v59, %v3244_v51  ;;  %v1350_v12 = vadd.f32 %v1318_v7, %v3247_v15 }
 0x1c8   :  { %v1354_v44 = vadd.f32 %v1322_v6, %v3250_v23  ;;  %v1358_v5 = vadd.f32 %v1326_v43, %v3884_v17  ;;  %v1362_v16 = vadd.f32 %v1330_v20, %v3885_v41  ;;  %v1366_v2 = vadd.f32 %v1334_v4, %v3886_v30  ;;  %v3894_v17 = vld [vmem:[#allocation45_spill] sm:$0xff] }
 0x1c9   :  { %1906 = vrsqrt.f32 %v1436_v38  ;;  %v1423_v0 = vadd.f32 %v1422_v1, %v1395_v8  ;;  %v3482_v34 = vadd.f32 %v1338_v10, %v3887_v31  ;;  %v1374_v45 = vmul.f32 %v1342_v36, %v1342_v36  ;;  %v3891_v8 = vld [vmem:[#allocation29_spill] sm:$0xff] }
 0x1ca   :  { %v1378_v13 = vmul.f32 %v1346_v18, %v1346_v18  ;;  %v1403_v51 = vmul.f32 %v3456_v50, %v3456_v50  ;;  %v1382_v58 = vmul.f32 %v1350_v12, %v1350_v12  ;;  %v1386_v15 = vmul.f32 %v1354_v44, %v1354_v44 }
 0x1cb   :  { %v1390_v3 = vmul.f32 %v1358_v5, %v1358_v5  ;;  %v1424_v23 = vadd.f32 %v1423_v0, %v1399_v14  ;;  %v1394_v37 = vmul.f32 %v1362_v16, %v1362_v16  ;;  %v1398_v26 = vmul.f32 %v1366_v2, %v1366_v2 }
 0x1cc   :  { %v1412_v35 = vadd.f32 %v1378_v13, %v1374_v45  ;;  %v1277_v32 = vmul.f32 %v3390_v28, %v3888_v54  ;;  %v1281_v60 = vmul.f32 %v3392_v9, %v3889_v57  ;;  %v1285_v48 = vmul.f32 %v3396_v63, %v3890_v25 }
 0x1cd   :  { %v1289_v40 = vmul.f32 %v3398_v33, %v3891_v8  ;;  %v1425_v19 = vadd.f32 %v1424_v23, %v1403_v51  ;;  %v1293_v14 = vmul.f32 %v3400_v39, %v3892_v55  ;;  %v1297_v46 = vmul.f32 %v3402_v29, %v3893_v27 }
 0x1ce   :  { %v1413_v61 = vadd.f32 %v1412_v35, %v1382_v58  ;;  %v1301_v28 = vmul.f32 %v3404_v49, %v3894_v17  ;;  %v1305_v9 = vmul.f32 %v3388_v11, %v3895_v53  ;;  %v1309_v62 = vmax.f32 %v1277_v32, 0.0 }
 0x1cf   :  { %v1313_v41 = vmax.f32 %v1281_v60, 0.0  ;;  %v1435_v63 = vmax.f32 %v1425_v19, 1e-24  ;;  %v1317_v30 = vmax.f32 %v1285_v48, 0.0  ;;  %v1321_v33 = vmax.f32 %v1289_v40, 0.0  ;;  %v1453_v48 = vld [vmem:[%s3579_s5 + $0x40] sm:$0xff] }
 0x1d0   :  { %v1414_v24 = vadd.f32 %v1413_v61, %v1386_v15  ;;  %v1325_v42 = vmax.f32 %v1293_v14, 0.0  ;;  %v1329_v31 = vmax.f32 %v1297_v46, 0.0  ;;  %v1333_v47 = vmax.f32 %v1301_v28, 0.0  ;;  %v1454_v40 = vld [vmem:[%s3579_s5 + $0x48] sm:$0xff]  ;;  %v1449_v19 = vld [vmem:[%s3579_s5 + $0x20] sm:$0xff]  ;;  %v1455_v61 = vld [vmem:[%s3579_s5 + $0x50] sm:$0xff] }
 0x1d1   :  { %v1337_v21 = vmax.f32 %v1305_v9, 0.0  ;;  %1908 = vrsqrt.f32 %v1435_v63  ;;  %v1341_v29 = vadd.f32 %v1309_v62, %v3888_v54  ;;  %v1345_v52 = vadd.f32 %v1313_v41, %v3889_v57  ;;  %v1456_v14 = vld [vmem:[%s3579_s5 + $0x58] sm:$0xff]  ;;  %v1458_v46 = vld [vmem:[%s3579_s5 + $0x68] sm:$0xff]  ;;  %v1480_v9 = vpop.permute.xlu0 %1479 }
 0x1d2   :  { %v1415_v39 = vadd.f32 %v1414_v24, %v1390_v3  ;;  %v1349_v49 = vadd.f32 %v1317_v30, %v3890_v25  ;;  %v1353_v11 = vadd.f32 %v1321_v33, %v3891_v8  ;;  %v1357_v59 = vadd.f32 %v1325_v42, %v3892_v55  ;;  %v1452_v25 = vld [vmem:[%s3579_s5 + $0x38] sm:$0xff]  ;;  %v1450_v55 = vld [vmem:[%s3579_s5 + $0x28] sm:$0xff] }
 0x1d3   :  { %v1361_v7 = vadd.f32 %v1329_v31, %v3893_v27  ;;  %v1365_v6 = vadd.f32 %v1333_v47, %v3894_v17  ;;  %v1369_v43 = vadd.f32 %v1337_v21, %v3895_v53  ;;  %v1373_v20 = vmul.f32 %v1341_v29, %v1341_v29  ;;  %v1448_v8 = vld [vmem:[%s3579_s5 + $0x18] sm:$0xff]  ;;  %v1457_v27 = vld [vmem:[%s3579_s5 + $0x60] sm:$0xff]  ;;  %v1459_v17 = vld [vmem:[%s3579_s5 + $0x70] sm:$0xff]  ;;  %v1485_v53 = vpop.permute.xlu1 %1484 }
 0x1d4   :  { %v1416_v56 = vadd.f32 %v1415_v39, %v1394_v37  ;;  %v1377_v38 = vmul.f32 %v1345_v52, %v1345_v52  ;;  %v1402_v10 = vmul.f32 %v3482_v34, %v3482_v34  ;;  %v1381_v18 = vmul.f32 %v1349_v49, %v1349_v49  ;;  %v1460_v28 = vld [vmem:[%s3579_s5 + $0x78] sm:$0xff] }
 0x1d5   :  { %v1385_v5 = vmul.f32 %v1353_v11, %v1353_v11  ;;  %v1389_v0 = vmul.f32 %v1357_v59, %v1357_v59  ;;  %v1393_v13 = vmul.f32 %v1361_v7, %v1361_v7  ;;  %v1397_v15 = vmul.f32 %v1365_v6, %v1365_v6  ;;  %v1490_v41 = vpop.permute.xlu0 %1489 }
 0x1d6   :  { %v1907_v4 = vpop.eup %1906  ;;  %v1417_v36 = vadd.f32 %v1416_v56, %v1398_v26  ;;  %v1405_v12 = vadd.f32 %v1377_v38, %v1373_v20  ;;  %v1401_v23 = vmul.f32 %v1369_v43, %v1369_v43 }
 0x1d7   :  { %v1444_v1 = vmul.f32 %v1907_v4, %v3421_v22  ;;  %v1495_v62 = vpop.permute.xlu1 %1494 }
 0x1d8   :  { %v1418_v44 = vadd.f32 %v1417_v36, %v1402_v10  ;;  %v1406_v16 = vadd.f32 %v1405_v12, %v1381_v18 }
 0x1d9   :  { %1844 = vmatprep.subr.mxu0 %v1444_v1  ;;  %1876 = vmatprep.subr.mxu1 %v1444_v1  ;;  %v1500_v24 = vpop.permute.xlu0 %1499 }
 0x1da   :  { %1845 = vmatpush3.msra.mxu0 %v1444_v1  ;;  %1880 = vmatpush3.msra.mxu1 %v1444_v1  ;;  %v1434_v2 = vmax.f32 %v1418_v44, 1e-24  ;;  %v1407_v45 = vadd.f32 %v1406_v16, %v1385_v5 }
 0x1db   :  { %v1505_v63 = vpop.permute.xlu1 %1504 }
 0x1dc   :  { %1910 = vrsqrt.f32 %v1434_v2  ;;  %v1408_v51 = vadd.f32 %v1407_v45, %v1389_v0 }
 0x1dd   :  { %v1510_v33 = vpop.permute.xlu0 %1509 }
 0x1de   :  { %v1909_v58 = vpop.eup %1908  ;;  %v1409_v3 = vadd.f32 %v1408_v51, %v1393_v13 }
 0x1df   :  { %v1443_v22 = vmul.f32 %v1909_v58, %v3456_v50  ;;  %v1446_v50 = vld [vmem:[%s3579_s5 + $0x8] sm:$0xff]  ;;  %v1515_v30 = vpop.permute.xlu1 %1514 }
 0x1e0   :  { %v1410_v37 = vadd.f32 %v1409_v3, %v1397_v15 }
 0x1e1   :  { %1846 = vmatprep.subr.mxu0 %v1443_v22  ;;  %1877 = vmatprep.subr.mxu1 %v1443_v22  ;;  %v1520_v31 = vpop.permute.xlu0 %1519 }
 0x1e2   :  { %1847 = vmatpush3.msra.mxu0 %v1443_v22  ;;  %1881 = vmatpush3.msra.mxu1 %v1443_v22  ;;  %v1411_v26 = vadd.f32 %v1410_v37, %v1401_v23 }
 0x1e3   :  { %v1525_v42 = vpop.permute.xlu1 %1524 }
 0x1e4   :  { %v1433_v35 = vmax.f32 %v1411_v26, 1e-24 }
 0x1e6   :  { %1912 = vrsqrt.f32 %v1433_v35 }
 0x1e7   :  { %v1535_v11 = vpop.permute.xlu1 %1534 }
 0x1e9   :  { %v1911_v54 = vpop.eup %1910 }
 0x1ea   :  { %v1442_v32 = vmul.f32 %v1911_v54, %v3482_v34  ;;  %v1447_v34 = vld [vmem:[%s3579_s5 + $0x10] sm:$0xff]  ;;  %s1937_s5 = smov [#allocation2]  }
 0x1eb   :  { %v1545_v44 = vpop.permute.xlu1 %1544  ;;  %s1771_s0 = sshll.u32 %s1937_s5, 4  ;;  %s1772_s0 = int_to_ptr.vmem [resolvable:$true] %s1771_s0 }
 0x1ec   :  { %1848 = vmatprep.subr.mxu0 %v1442_v32  ;;  %1878 = vmatprep.subr.mxu1 %v1442_v32  ;;  %s1914_s27 = scalar_lea.vmem %s1772_s0, 2048  ;;  %p1919_p1 = scmp.lt.s32.totalorder %s1772_s0, %s1772_s0 }
 0x1ed   :  { %1849 = vmatpush3.msra.mxu0 %v1442_v32  ;;  %1882 = vmatpush3.msra.mxu1 %v1442_v32  ;;  %p1915_p0 = scmp.ne.s32.totalorder %s1772_s0, %s1914_s27  ;;  %p1920_p2 = scmp.lt.s32.totalorder %s1914_s27, %s1914_s27 }
 0x1ef   :  { %v1555_v23 = vpop.permute.xlu1 %1554  ;;  %p1921_p3 = por %p1920_p2, %p1919_p1 }
 0x1f1   :  { %p1922_p4 = pnand %p1921_p3, %p1915_p0 }
 0x1f3   :  { %v1913_v57 = vpop.eup %1912 }
 0x1f4   :  { %v1441_v60 = vmul.f32 %v1913_v57, %v1369_v43  ;;  %v1530_v43 = vpop.permute.xlu0 %1529 }
 0x1f6   :  { %1850 = vmatprep.subr.mxu0 %v1441_v60  ;;  %1879 = vmatprep.subr.mxu1 %v1441_v60 }
 0x1f7   :  { %1851 = vmatpush3.msra.mxu0 %v1441_v60  ;;  %1883 = vmatpush3.msra.mxu1 %v1441_v60 }
 0x1f8   :  { %1853 = vmatmul.mubr.msk.f32.vlgmr.msra.gmra.mxu0 %vm59_vm0, %v1446_v50  ;;  %1862 = vmatmul.mubr.msk.f32.vlgmr.msra.gmra.mxu1 %vm59_vm0, %v1452_v25  ;;  %v1540_v51 = vpop.permute.xlu0 %1539 }
 0x1f9   :  { %1855 = vmatprep.mubr.msk.f32.mxu0 %vm59_vm0, %v1447_v34  ;;  %1864 = vmatprep.mubr.msk.f32.mxu1 %vm59_vm0, %v1453_v48 }
 0x1fc   :  { %1856 = vmatmul.mubr.msk.f32.gmra.mxu0 %vm59_vm0, %v1448_v8  ;;  %1865 = vmatmul.mubr.msk.f32.gmra.mxu1 %vm59_vm0, %v1454_v40  ;;  %v1550_v35 = vpop.permute.xlu0 %1549 }
 0x1fd   :  { %1858 = vmatprep.mubr.msk.f32.mxu0 %vm59_vm0, %v1449_v19  ;;  %1867 = vmatprep.mubr.msk.f32.mxu1 %vm59_vm0, %v1455_v61 }
 0x200   :  { %1859 = vmatmul.mubr.msk.f32.gmra.mxu0 %vm59_vm0, %v1450_v55  ;;  %1868 = vmatmul.mubr.msk.f32.gmra.mxu1 %vm59_vm0, %v1456_v14 }
 0x201   :  { %1870 = vmatprep.mubr.msk.f32.mxu1 %vm59_vm0, %v1457_v27 }
 0x204   :  { %1871 = vmatmul.mubr.msk.f32.gmra.mxu1 %vm59_vm0, %v1458_v46 }
 0x205   :  { %1873 = vmatprep.mubr.msk.f32.mxu1 %vm59_vm0, %v1459_v17 }
 0x208   :  { %1874 = vmatmul.mubr.msk.f32.gmra.mxu1 %vm59_vm0, %v1460_v28 }
 0x2b8   :  { %v1854_v47 = vpop.f32.mrf.mxu0  ;;  %v1863_v21 = vpop.f32.mrf.mxu1 }
 0x2b9   :  { %v1677_v39 = vadd.f32 %v1854_v47, %v1485_v53  ;;  %v1707_v29 = vadd.f32 %v1863_v21, %v1515_v30 }
 0x2ba   :  { %v1671_v52 = vpop.f32.mrf.mxu0  ;;  %v1701_v49 = vpop.f32.mrf.mxu1 }
 0x2bb   :  { %1751 = vst [vmem:[#allocation2 + $0x8] sm:$0xff] %v1677_v39  ;;  %1757 = vst [vmem:[#allocation2 + $0x38] sm:$0xff] %v1707_v29  ;;  %v1672_v59 = vadd.f32 %v1671_v52, %v1480_v9  ;;  %v1702_v7 = vadd.f32 %v1701_v49, %v1510_v33 }
 0x2bc   :  { %v1857_v56 = vpop.f32.mrf.mxu0  ;;  %v1866_v6 = vpop.f32.mrf.mxu1 }
 0x2bd   :  { %1750 = vst [vmem:[#allocation2] sm:$0xff] %v1672_v59  ;;  %1756 = vst [vmem:[#allocation2 + $0x30] sm:$0xff] %v1702_v7  ;;  %v1687_v20 = vadd.f32 %v1857_v56, %v1495_v62  ;;  %v1717_v38 = vadd.f32 %v1866_v6, %v1525_v42 }
 0x2be   :  { %v1681_v4 = vpop.f32.mrf.mxu0  ;;  %v1711_v10 = vpop.f32.mrf.mxu1 }
 0x2bf   :  { %1753 = vst [vmem:[#allocation2 + $0x18] sm:$0xff] %v1687_v20  ;;  %1759 = vst [vmem:[#allocation2 + $0x48] sm:$0xff] %v1717_v38  ;;  %v1682_v36 = vadd.f32 %v1681_v4, %v1490_v41  ;;  %v1712_v1 = vadd.f32 %v1711_v10, %v1520_v31 }
 0x2c0   :  { %v1860_v18 = vpop.f32.mrf.mxu0  ;;  %v1869_v12 = vpop.f32.mrf.mxu1 }
 0x2c1   :  { %1752 = vst [vmem:[#allocation2 + $0x10] sm:$0xff] %v1682_v36  ;;  %1758 = vst [vmem:[#allocation2 + $0x40] sm:$0xff] %v1712_v1  ;;  %v1697_v5 = vadd.f32 %v1860_v18, %v1505_v63  ;;  %v1727_v16 = vadd.f32 %v1869_v12, %v1535_v11 }
 0x2c2   :  { %v1691_v2 = vpop.f32.mrf.mxu0  ;;  %v1721_v0 = vpop.f32.mrf.mxu1 }
 0x2c3   :  { %1755 = vst [vmem:[#allocation2 + $0x28] sm:$0xff] %v1697_v5  ;;  %1761 = vst [vmem:[#allocation2 + $0x58] sm:$0xff] %v1727_v16  ;;  %v1692_v45 = vadd.f32 %v1691_v2, %v1500_v24  ;;  %v1722_v13 = vadd.f32 %v1721_v0, %v1530_v43 }
 0x2c4   :  { %v1872_v58 = vpop.f32.mrf.mxu1 }
 0x2c5   :  { %1754 = vst [vmem:[#allocation2 + $0x20] sm:$0xff] %v1692_v45  ;;  %1760 = vst [vmem:[#allocation2 + $0x50] sm:$0xff] %v1722_v13  ;;  %v1737_v15 = vadd.f32 %v1872_v58, %v1545_v44 }
 0x2c6   :  { %v1731_v3 = vpop.f32.mrf.mxu1 }
 0x2c7   :  { %1763 = vst [vmem:[#allocation2 + $0x68] sm:$0xff] %v1737_v15  ;;  %v1732_v22 = vadd.f32 %v1731_v3, %v1540_v51 }
 0x2c8   :  { %v1875_v37 = vpop.f32.mrf.mxu1 }
 0x2c9   :  { %1762 = vst [vmem:[#allocation2 + $0x60] sm:$0xff] %v1732_v22  ;;  %v1747_v26 = vadd.f32 %v1875_v37, %v1555_v23 }
 0x2ca   :  { %v1741_v54 = vpop.f32.mrf.mxu1 }
 0x2cb   :  { %1765 = vst [vmem:[#allocation2 + $0x78] sm:$0xff] %v1747_v26  ;;  %v1742_v32 = vadd.f32 %v1741_v54, %v1550_v35 }
 0x2cd   :  { %1764 = vst [vmem:[#allocation2 + $0x70] sm:$0xff] %v1742_v32 }
 0x2ce   :  { %1925 = shalt.err (!%p1922_p4)
}
 0x2cf   :  { %s1938_s28 = smov 128   ;;  %s1939_s29 = smov 8  }
 0x2d0   :  { %1777 = dma.vmem_to_hbm [thread:$0]  %s1772_s0, 2048, %s3581_s7, [#allocation3], %s1938_s28, %s1938_s28, %s1939_s29  }
 0x2d1   :  { %1934 = dma.done.wait [#allocation3], 2048  }
 0x2d2   :  { %1935 = vsyncadd [#allocation3], 4294965248 }
 0x2d3   :  { %1781 = vsyncpa [#allocation3], 1 }

</bundles_post_ra>
